<compile_context>
chip_gen: v5e
topology: v5e:2x2
jax: 0.10.0
libtpu: 0.0.40
codegen_flags: <defaults>
</compile_context>

<pallas_src>
import functools
import math

import jax
import jax.numpy as jnp
from jax.experimental import pallas as pl
from jax.experimental.pallas import tpu as pltpu


# ---------------------------------------------------------------------------
# Helpers
# ---------------------------------------------------------------------------

def _layer_norm(y, g, b, eps=1e-5):
    mu = jnp.mean(y, axis=-1, keepdims=True)
    var = jnp.mean((y - mu) * (y - mu), axis=-1, keepdims=True)
    return (y - mu) * jax.lax.rsqrt(var + eps) * g + b


def _vmem_limit_bytes():
    """~100 MiB on 128-MiB-VMEM chips (v5e/v6e), ~56 MiB on v7x (64 MiB)."""
    cap = None
    try:
        cap = getattr(pltpu.get_tpu_info(), "vmem_capacity_bytes", None)
    except Exception:
        cap = None
    if not cap:
        cap = 64 << 20                     # conservative fallback (v7x-safe)
    return int(min(max(cap - (8 << 20), 32 << 20), 100 << 20))


# ---------------------------------------------------------------------------
# Fused multi-block / multi-layer encoder kernel
# ---------------------------------------------------------------------------

def _fused_encoder_kernel(x_ref, utt_r_ref, utt_c_ref, spk_r_ref, spk_c_ref,
                          wqkv_ref, bqkv_ref, wo_ref, bo_ref,
                          w1_ref, b1_ref, w2_ref, b2_ref,
                          g1_ref, be1_ref, g2_ref, be2_ref,
                          out_ref, y_ref, heads_ref,
                          *, nhead, window, bidirectional, kind_offset):
    l = pl.program_id(1)

    @pl.when(l == 0)
    def _():                                     # fresh block: load src (+PE)
        y_ref[...] = x_ref[...]

    x = y_ref[...]                               # (S, E) f32, VMEM resident
    S, E = x.shape
    H = nhead
    Dh = E // H
    scale = 1.0 / math.sqrt(Dh)

    # ---- additive attention mask built in-kernel (no (S,S) HBM traffic) ----
    # kind: 0 = any-utterance, 1 = same-speaker(+self), 2 = other-speaker(+self)
    kind = pl.program_id(0) + kind_offset
    neg = jnp.float32(-1e9)
    i = jax.lax.broadcasted_iota(jnp.int32, (S, S), 0)
    j = jax.lax.broadcasted_iota(jnp.int32, (S, S), 1)
    local = jnp.abs(i - j) <= window
    if not bidirectional:
        local = jnp.logical_and(local, j <= i)
    valid = jnp.logical_and(utt_r_ref[...] > 0, utt_c_ref[...] > 0)   # (S, S)
    same = spk_r_ref[...] == spk_c_ref[...]                           # (S, S)
    diag = i == j
    base_add = jnp.where(jnp.logical_and(local, valid), 0.0, neg)
    same_add = jnp.where(jnp.logical_or(same, diag), 0.0, neg)
    other_add = jnp.where(jnp.logical_or(jnp.logical_not(same), diag), 0.0, neg)
    w_same = (kind == 1).astype(jnp.float32)     # scalar 0/1 selectors
    w_other = (kind == 2).astype(jnp.float32)
    addmask = base_add + w_same * same_add + w_other * other_add      # (S, S)

    # ---- attention: fused QKV projection (bf16 MXU, f32 accumulation) ----
    x_bf = x.astype(jnp.bfloat16)
    qkv = jnp.dot(x_bf, wqkv_ref[...],
                  preferred_element_type=jnp.float32) + bqkv_ref[...]
    qkv = qkv.astype(jnp.bfloat16)               # single bf16 cast for all heads

    for h in range(H):                           # static -> unrolled (small H)
        qh = qkv[:, h * Dh:(h + 1) * Dh]
        kh = qkv[:, E + h * Dh:E + (h + 1) * Dh]
        vh = qkv[:, 2 * E + h * Dh:2 * E + (h + 1) * Dh]
        s = jax.lax.dot_general(qh, kh, (((1,), (1,)), ((), ())),
                                preferred_element_type=jnp.float32) * scale
        s = s + addmask
        s = s - jnp.max(s, axis=-1, keepdims=True)
        p = jnp.exp(s)                                             # (S, S) f32
        denom = jnp.sum(p, axis=-1, keepdims=True)
        # deferred normalization: scale the (S, Dh) output, not the (S, S) p
        oh = jnp.dot(p.astype(jnp.bfloat16), vh,
                     preferred_element_type=jnp.float32)           # (S, Dh)
        heads_ref[:, h * Dh:(h + 1) * Dh] = oh * pl.reciprocal(denom, approx=True)

    # one full-K output projection instead of H under-filled K=Dh matmuls
    attn = jnp.dot(heads_ref[...].astype(jnp.bfloat16), wo_ref[...],
                   preferred_element_type=jnp.float32) + bo_ref[...]

    # residual + norm1 (post-LN)
    y = _layer_norm(x + attn, g1_ref[...], be1_ref[...])

    # FFN (ReLU) + residual + norm2; only a bf16 (S, F) intermediate stays live
    ff = jnp.dot(y.astype(jnp.bfloat16), w1_ref[...],
                 preferred_element_type=jnp.float32) + b1_ref[...]
    ff = jnp.maximum(ff, 0.0).astype(jnp.bfloat16)
    ff = jnp.dot(ff, w2_ref[...],
                 preferred_element_type=jnp.float32) + b2_ref[...]
    y2 = _layer_norm(y + ff, g2_ref[...], be2_ref[...])

    y_ref[...] = y2                              # stays in VMEM for next layer

    @pl.when(l == pl.num_programs(1) - 1)
    def _():
        out_ref[...] = y2.astype(out_ref.dtype)


def _fusion_classifier_kernel(feat_ref, wf_ref, wc_ref, bc_ref, out_ref):
    """FusionAttention (softmax over blocks) + Linear classifier + log_softmax."""
    NB = feat_ref.shape[0]                       # static number of blocks
    wf = wf_ref[...]                             # (1, E) f32

    feats = [feat_ref[b] for b in range(NB)]                          # (TS, E)
    # fusion scores: VPU multiply + lane reduce (no N=1 MXU matmuls)
    scores = [jnp.sum(f * wf, axis=-1, keepdims=True) for f in feats]

    m = scores[0]
    for b in range(1, NB):
        m = jnp.maximum(m, scores[b])
    exps = [jnp.exp(s - m) for s in scores]
    den = exps[0]
    for b in range(1, NB):
        den = den + exps[b]
    inv = pl.reciprocal(den, approx=True)
    fused = (exps[0] * inv) * feats[0]
    for b in range(1, NB):
        fused = fused + (exps[b] * inv) * feats[b]                    # (TS, E)

    # lane-dense (>=128 wide) padded logits; padded columns carry a -1e9 bias
    # so they contribute ~0 to the log-softmax denominator.
    logits = jnp.dot(fused.astype(jnp.bfloat16), wc_ref[...],
                     preferred_element_type=jnp.float32) + bc_ref[...]
    z = logits - jnp.max(logits, axis=-1, keepdims=True)
    lse = jnp.log(jnp.sum(jnp.exp(z), axis=-1, keepdims=True))
    out_ref[...] = (z - lse).astype(out_ref.dtype)


# ---------------------------------------------------------------------------
# pallas_call wrappers
# ---------------------------------------------------------------------------

def encoder_blocks(x, utt_row, utt_col, spk_row, spk_col, enc, nhead,
                   window, bidirectional, num_block):
    """Run all num_block encoder stacks in one fused pallas_call."""
    NB, L, E, _ = enc['wqkv'].shape
    F = enc['w1'].shape[3]
    S = x.shape[0]
    # blocks -> mask kind: NB==1 -> [utt]; NB==2 -> [same, other]; NB==3 -> all
    kind_offset = 1 if num_block == 2 else 0

    def wspec(tail):
        return pl.BlockSpec((None, None) + tail, lambda b, l: (b, l, 0, 0))

    in_specs = [
        pl.BlockSpec((S, E), lambda b, l: (0, 0)),   # src (+PE), fetched once
        pl.BlockSpec((S, 1), lambda b, l: (0, 0)),   # utt mask (row form)
        pl.BlockSpec((1, S), lambda b, l: (0, 0)),   # utt mask (col form)
        pl.BlockSpec((S, 1), lambda b, l: (0, 0)),   # spk ids  (row form)
        pl.BlockSpec((1, S), lambda b, l: (0, 0)),   # spk ids  (col form)
        wspec((E, 3 * E)),    # wqkv (bf16)
        wspec((1, 3 * E)),    # bqkv
        wspec((E, E)),        # wo (bf16)
        wspec((1, E)),        # bo
        wspec((E, F)),        # w1 (bf16)
        wspec((1, F)),        # b1
        wspec((F, E)),        # w2 (bf16)
        wspec((1, E)),        # b2
        wspec((1, E)),        # g1
        wspec((1, E)),        # be1
        wspec((1, E)),        # g2
        wspec((1, E)),        # be2
    ]
    out_spec = pl.BlockSpec((None, S, E), lambda b, l: (b, 0, 0))

    kernel = functools.partial(_fused_encoder_kernel, nhead=nhead,
                               window=int(window),
                               bidirectional=bool(bidirectional),
                               kind_offset=kind_offset)
    return pl.pallas_call(
        kernel,
        out_shape=jax.ShapeDtypeStruct((NB, S, E), jnp.float32),
        grid_spec=pltpu.PrefetchScalarGridSpec(
            num_scalar_prefetch=0,
            grid=(NB, L),
            in_specs=in_specs,
            out_specs=out_spec,
            scratch_shapes=[pltpu.VMEM((S, E), jnp.float32),   # layer activation
                            pltpu.VMEM((S, E), jnp.float32)]), # staged head outs
        compiler_params=pltpu.CompilerParams(
            dimension_semantics=("parallel", "arbitrary"),
            vmem_limit_bytes=_vmem_limit_bytes()),
    )(x, utt_row, utt_col, spk_row, spk_col,
      enc['wqkv'], enc['bqkv'], enc['wo'], enc['bo'],
      enc['w1'], enc['b1'], enc['w2'], enc['b2'],
      enc['g1'], enc['be1'], enc['g2'], enc['be2'])


def fusion_classifier(feat, wf, wc_pad, bc_pad, num_class):
    NB, S, E = feat.shape
    Cpad = wc_pad.shape[1]
    ts = S
    for cand in (512, 256, 128):                 # S-tile so (NB,S,E) never sits whole
        if S % cand == 0:
            ts = cand
            break
    out = pl.pallas_call(
        _fusion_classifier_kernel,
        out_shape=jax.ShapeDtypeStruct((S, Cpad), jnp.float32),
        grid_spec=pltpu.PrefetchScalarGridSpec(
            num_scalar_prefetch=0,
            grid=(S // ts,),
            in_specs=[
                pl.BlockSpec((NB, ts, E), lambda s: (0, s, 0)),
                pl.BlockSpec((1, E), lambda s: (0, 0)),
                pl.BlockSpec((E, Cpad), lambda s: (0, 0)),
                pl.BlockSpec((1, Cpad), lambda s: (0, 0)),
            ],
            out_specs=pl.BlockSpec((ts, Cpad), lambda s: (s, 0))),
        compiler_params=pltpu.CompilerParams(
            dimension_semantics=("parallel",),
            vmem_limit_bytes=_vmem_limit_bytes()),
    )(feat, wf, wc_pad, bc_pad)
    return out[:, :num_class]


# ---------------------------------------------------------------------------
# Glue: positional encoding, parameter init, forward
# ---------------------------------------------------------------------------

def sinusoidal_pe(max_len, d):
    pos = jnp.arange(max_len, dtype=jnp.float32)[:, None]
    idx = jnp.arange(0, d, 2, dtype=jnp.float32)
    div = jnp.exp(-jnp.log(jnp.float32(10000.0)) * idx / d)
    pe = jnp.zeros((max_len, d), jnp.float32)
    pe = pe.at[:, 0::2].set(jnp.sin(pos * div))
    pe = pe.at[:, 1::2].set(jnp.cos(pos * div))
    return pe


def xavier_uniform(key, shape, fan_in, fan_out):
    lim = math.sqrt(6.0 / (fan_in + fan_out))
    return jax.random.uniform(key, shape, jnp.float32, -lim, lim)


def init_triple_transformer(key, nhead, num_layer, emb_dim, max_len, num_class,
                            bidirectional, num_block, ffn_dim):
    E, F = emb_dim, ffn_dim
    kenc, kwf, kwc = jax.random.split(key, 3)
    lkeys = jax.random.split(kenc, num_block * num_layer)

    wqkv, wo, w1, w2 = [], [], [], []
    for b in range(num_block):
        wqkv_b, wo_b, w1_b, w2_b = [], [], [], []
        for l in range(num_layer):
            ks = jax.random.split(lkeys[b * num_layer + l], 6)
            wq = xavier_uniform(ks[0], (E, E), E, E)
            wk = xavier_uniform(ks[1], (E, E), E, E)
            wv = xavier_uniform(ks[2], (E, E), E, E)
            woL = xavier_uniform(ks[3], (E, E), E, E)
            w1L = xavier_uniform(ks[4], (E, F), E, F)
            w2L = xavier_uniform(ks[5], (F, E), F, E)
            wqkv_b.append(jnp.concatenate([wq, wk, wv], axis=1))
            wo_b.append(woL)
            w1_b.append(w1L)
            w2_b.append(w2L)
        wqkv.append(jnp.stack(wqkv_b))
        wo.append(jnp.stack(wo_b))
        w1.append(jnp.stack(w1_b))
        w2.append(jnp.stack(w2_b))

    NB, L = num_block, num_layer
    enc = dict(
        wqkv=jnp.stack(wqkv).astype(jnp.bfloat16),             # (NB, L, E, 3E)
        bqkv=jnp.zeros((NB, L, 1, 3 * E), jnp.float32),
        wo=jnp.stack(wo).astype(jnp.bfloat16),                 # (NB, L, E, E)
        bo=jnp.zeros((NB, L, 1, E), jnp.float32),
        w1=jnp.stack(w1).astype(jnp.bfloat16),                 # (NB, L, E, F)
        b1=jnp.zeros((NB, L, 1, F), jnp.float32),
        w2=jnp.stack(w2).astype(jnp.bfloat16),                 # (NB, L, F, E)
        b2=jnp.zeros((NB, L, 1, E), jnp.float32),
        g1=jnp.ones((NB, L, 1, E), jnp.float32),
        be1=jnp.zeros((NB, L, 1, E), jnp.float32),
        g2=jnp.ones((NB, L, 1, E), jnp.float32),
        be2=jnp.zeros((NB, L, 1, E), jnp.float32),
    )

    # classifier, lane-padded to a multiple of 128 output columns (bf16 weight)
    Cpad = max(128, ((num_class + 127) // 128) * 128)
    wc = xavier_uniform(kwc, (E, num_class), E, num_class)
    wc_pad = jnp.zeros((E, Cpad), jnp.float32).at[:, :num_class].set(wc)
    wc_pad = wc_pad.astype(jnp.bfloat16)
    bc_pad = jnp.full((1, Cpad), -1e9, jnp.float32).at[:, :num_class].set(0.0)

    return dict(nhead=nhead, num_layer=num_layer, num_block=num_block,
                num_class=num_class, bidirectional=bidirectional,
                pe=sinusoidal_pe(max_len, emb_dim),
                enc=enc,
                # FusionAttention.wf is (1, emb_dim, 1) in PyTorch; stored (1, E)
                wf=xavier_uniform(kwf, (1, E), E, 1),
                wc_pad=wc_pad, bc_pad=bc_pad)


def triple_transformer_forward(params, src, utt_mask, spk_mask, window=100):
    S, _ = src.shape
    utt = utt_mask.astype(jnp.float32)
    spk = spk_mask.astype(jnp.float32)
    utt_row, utt_col = utt.reshape(S, 1), utt.reshape(1, S)
    spk_row, spk_col = spk.reshape(S, 1), spk.reshape(1, S)

    x = src + params['pe'][:S]        # absolute positional encoding (glue)

    feat = encoder_blocks(x, utt_row, utt_col, spk_row, spk_col,
                          params['enc'], params['nhead'],
                          window, params['bidirectional'],
                          params['num_block'])                     # (NB, S, E)
    # NB==1: fusion softmax over a single block is identity -> same result.
    return fusion_classifier(feat, params['wf'], params['wc_pad'],
                             params['bc_pad'], params['num_class'])


# ---------------------------------------------------------------------------

if __name__ == "__main__":
    S, E, H, L, C, FF, MAXLEN = 8, 32, 4, 2, 6, 64, 64
    NUM_BLOCK, BIDIR = 2, True

    key = jax.random.PRNGKey(0)
    kp, kx = jax.random.split(key)
    params = init_triple_transformer(kp, H, L, E, MAXLEN, C, BIDIR, NUM_BLOCK, FF)

    src = jax.random.normal(kx, (S, E), jnp.float32)
    utt_mask = jnp.ones((S,), jnp.float32)
    spk_mask = jnp.array([0, 0, 1, 1, 0, 1, 0, 1], jnp.float32)

    log_prob = triple_transformer_forward(params, src, utt_mask, spk_mask, window=100)
    log_prob = jax.block_until_ready(log_prob)
    assert log_prob.shape == (S, C)
    assert bool(jnp.all(jnp.isfinite(log_prob)))
    print("KERNEL_OK")
</pallas_src>

<mosaic_0001>
module attributes {stable_mosaic.version = 11 : i64} {
  func.func @_fused_encoder_kernel(%arg0: i32, %arg1: i32, %arg2: memref<8x32xf32, #tpu.memory_space<vmem>>, %arg3: memref<8x1xf32, #tpu.memory_space<vmem>>, %arg4: memref<1x8xf32, #tpu.memory_space<vmem>>, %arg5: memref<8x1xf32, #tpu.memory_space<vmem>>, %arg6: memref<1x8xf32, #tpu.memory_space<vmem>>, %arg7: memref<1x1x32x96xbf16, #tpu.memory_space<vmem>>, %arg8: memref<1x1x1x96xf32, #tpu.memory_space<vmem>>, %arg9: memref<1x1x32x32xbf16, #tpu.memory_space<vmem>>, %arg10: memref<1x1x1x32xf32, #tpu.memory_space<vmem>>, %arg11: memref<1x1x32x64xbf16, #tpu.memory_space<vmem>>, %arg12: memref<1x1x1x64xf32, #tpu.memory_space<vmem>>, %arg13: memref<1x1x64x32xbf16, #tpu.memory_space<vmem>>, %arg14: memref<1x1x1x32xf32, #tpu.memory_space<vmem>>, %arg15: memref<1x1x1x32xf32, #tpu.memory_space<vmem>>, %arg16: memref<1x1x1x32xf32, #tpu.memory_space<vmem>>, %arg17: memref<1x1x1x32xf32, #tpu.memory_space<vmem>>, %arg18: memref<1x1x1x32xf32, #tpu.memory_space<vmem>>, %arg19: memref<1x8x32xf32, #tpu.memory_space<vmem>>, %arg20: memref<8x32xf32, #tpu.memory_space<vmem>>, %arg21: memref<8x32xf32, #tpu.memory_space<vmem>>) attributes {dimension_semantics = [#tpu.dimension_semantics<parallel>, #tpu.dimension_semantics<arbitrary>], iteration_bounds = array<i64: 2, 2>, scalar_prefetch = 0 : i64, scratch_operands = 2 : i64, tpu.core_type = #tpu.core_type<tc>, window_params = [{pipeline_mode = #tpu.pipeline_mode<synchronous>, transform_indices = @transform_0, window_bounds = array<i64: 8, 32>}, {pipeline_mode = #tpu.pipeline_mode<synchronous>, transform_indices = @transform_1, window_bounds = array<i64: 8, 1>}, {pipeline_mode = #tpu.pipeline_mode<synchronous>, transform_indices = @transform_2, window_bounds = array<i64: 1, 8>}, {pipeline_mode = #tpu.pipeline_mode<synchronous>, transform_indices = @transform_3, window_bounds = array<i64: 8, 1>}, {pipeline_mode = #tpu.pipeline_mode<synchronous>, transform_indices = @transform_4, window_bounds = array<i64: 1, 8>}, {transform_indices = @transform_5, window_bounds = array<i64: 1, 1, 32, 96>}, {transform_indices = @transform_6, window_bounds = array<i64: 1, 1, 1, 96>}, {transform_indices = @transform_7, window_bounds = array<i64: 1, 1, 32, 32>}, {transform_indices = @transform_8, window_bounds = array<i64: 1, 1, 1, 32>}, {transform_indices = @transform_9, window_bounds = array<i64: 1, 1, 32, 64>}, {transform_indices = @transform_10, window_bounds = array<i64: 1, 1, 1, 64>}, {transform_indices = @transform_11, window_bounds = array<i64: 1, 1, 64, 32>}, {transform_indices = @transform_12, window_bounds = array<i64: 1, 1, 1, 32>}, {transform_indices = @transform_13, window_bounds = array<i64: 1, 1, 1, 32>}, {transform_indices = @transform_14, window_bounds = array<i64: 1, 1, 1, 32>}, {transform_indices = @transform_15, window_bounds = array<i64: 1, 1, 1, 32>}, {transform_indices = @transform_16, window_bounds = array<i64: 1, 1, 1, 32>}, {transform_indices = @transform_17, window_bounds = array<i64: 1, 8, 32>}]} {
    %c0_i32 = arith.constant 0 : i32
    %0 = arith.cmpi eq, %arg1, %c0_i32 : i32
    %1 = arith.extui %0 : i1 to i32
    %c0_i32_0 = arith.constant 0 : i32
    %2 = arith.cmpi ne, %1, %c0_i32_0 : i32
    scf.if %2 {
      %c0_113 = arith.constant 0 : index
      %c0_114 = arith.constant 0 : index
      %229 = vector.load %arg2[%c0_113, %c0_114] : memref<8x32xf32, #tpu.memory_space<vmem>>, vector<8x32xf32>
      %c0_115 = arith.constant 0 : index
      %c0_116 = arith.constant 0 : index
      %230 = vector.load %arg20[%c0_115, %c0_116] : memref<8x32xf32, #tpu.memory_space<vmem>>, vector<8x32xf32>
      tpu.vector_store %arg20[%c0_115, %c0_116], %229 {strides = array<i32>} : memref<8x32xf32, #tpu.memory_space<vmem>>, vector<8x32xf32>,
    } else {
    }
    %c0 = arith.constant 0 : index
    %c0_1 = arith.constant 0 : index
    %3 = vector.load %arg20[%c0, %c0_1] : memref<8x32xf32, #tpu.memory_space<vmem>>, vector<8x32xf32>
    %c1_i32 = arith.constant 1 : i32
    %4 = arith.addi %arg0, %c1_i32 : i32
    %5 = tpu.iota {dimensions = array<i32: 0>} : vector<8x8xi32>
    %6 = tpu.iota {dimensions = array<i32: 1>} : vector<8x8xi32>
    %7 = arith.subi %5, %6 : vector<8x8xi32>
    %8 = math.absi %7 : vector<8x8xi32>
    %c100_i32 = arith.constant 100 : i32
    %9 = vector.broadcast %c100_i32 : i32 to vector<8x8xi32>
    %10 = arith.cmpi sle, %8, %9 : vector<8x8xi32>
    %c0_2 = arith.constant 0 : index
    %c0_3 = arith.constant 0 : index
    %11 = vector.load %arg3[%c0_2, %c0_3] : memref<8x1xf32, #tpu.memory_space<vmem>>, vector<8x1xf32>
    %cst = arith.constant 0.000000e+00 : f32
    %12 = vector.broadcast %cst : f32 to vector<8x1xf32>
    %13 = arith.cmpf ogt, %11, %12 : vector<8x1xf32>
    %c0_4 = arith.constant 0 : index
    %c0_5 = arith.constant 0 : index
    %14 = vector.load %arg4[%c0_4, %c0_5] : memref<1x8xf32, #tpu.memory_space<vmem>>, vector<1x8xf32>
    %cst_6 = arith.constant 0.000000e+00 : f32
    %15 = vector.broadcast %cst_6 : f32 to vector<1x8xf32>
    %16 = arith.cmpf ogt, %14, %15 : vector<1x8xf32>
    %17 = vector.broadcast %13 : vector<8x1xi1> to vector<8x8xi1>
    %18 = vector.broadcast %16 : vector<1x8xi1> to vector<8x8xi1>
    %19 = arith.andi %17, %18 : vector<8x8xi1>
    %c0_7 = arith.constant 0 : index
    %c0_8 = arith.constant 0 : index
    %20 = vector.load %arg5[%c0_7, %c0_8] : memref<8x1xf32, #tpu.memory_space<vmem>>, vector<8x1xf32>
    %c0_9 = arith.constant 0 : index
    %c0_10 = arith.constant 0 : index
    %21 = vector.load %arg6[%c0_9, %c0_10] : memref<1x8xf32, #tpu.memory_space<vmem>>, vector<1x8xf32>
    %22 = vector.broadcast %20 : vector<8x1xf32> to vector<8x8xf32>
    %23 = vector.broadcast %21 : vector<1x8xf32> to vector<8x8xf32>
    %24 = arith.cmpf oeq, %22, %23 : vector<8x8xf32>
    %25 = arith.cmpi eq, %5, %6 : vector<8x8xi32>
    %26 = arith.andi %10, %19 : vector<8x8xi1>
    %cst_11 = arith.constant 0.000000e+00 : f32
    %cst_12 = arith.constant -1.000000e+09 : f32
    %27 = vector.broadcast %cst_11 : f32 to vector<8x8xf32>
    %28 = vector.broadcast %cst_12 : f32 to vector<8x8xf32>
    %29 = arith.select %26, %27, %28 : vector<8x8xi1>, vector<8x8xf32>
    %30 = arith.ori %24, %25 : vector<8x8xi1>
    %cst_13 = arith.constant 0.000000e+00 : f32
    %cst_14 = arith.constant -1.000000e+09 : f32
    %31 = vector.broadcast %cst_13 : f32 to vector<8x8xf32>
    %32 = vector.broadcast %cst_14 : f32 to vector<8x8xf32>
    %33 = arith.select %30, %31, %32 : vector<8x8xi1>, vector<8x8xf32>
    %cst_15 = arith.constant dense<true> : vector<8x8xi1>
    %34 = arith.xori %24, %cst_15 : vector<8x8xi1>
    %35 = arith.ori %34, %25 : vector<8x8xi1>
    %cst_16 = arith.constant 0.000000e+00 : f32
    %cst_17 = arith.constant -1.000000e+09 : f32
    %36 = vector.broadcast %cst_16 : f32 to vector<8x8xf32>
    %37 = vector.broadcast %cst_17 : f32 to vector<8x8xf32>
    %38 = arith.select %35, %36, %37 : vector<8x8xi1>, vector<8x8xf32>
    %c1_i32_18 = arith.constant 1 : i32
    %39 = arith.cmpi eq, %4, %c1_i32_18 : i32
    %40 = arith.extui %39 : i1 to i32
    %41 = arith.sitofp %40 : i32 to f32
    %c2_i32 = arith.constant 2 : i32
    %42 = arith.cmpi eq, %4, %c2_i32 : i32
    %43 = arith.extui %42 : i1 to i32
    %44 = arith.sitofp %43 : i32 to f32
    %45 = vector.broadcast %41 : f32 to vector<8x8xf32>
    %46 = arith.mulf %45, %33 : vector<8x8xf32>
    %47 = arith.addf %29, %46 : vector<8x8xf32>
    %48 = vector.broadcast %44 : f32 to vector<8x8xf32>
    %49 = arith.mulf %48, %38 : vector<8x8xf32>
    %50 = arith.addf %47, %49 : vector<8x8xf32>
    %51 = arith.truncf %3 : vector<8x32xf32> to vector<8x32xbf16>
    %c0_19 = arith.constant 0 : index
    %c0_20 = arith.constant 0 : index
    %c0_21 = arith.constant 0 : index
    %c0_22 = arith.constant 0 : index
    %52 = vector.load %arg7[%c0_19, %c0_20, %c0_21, %c0_22] : memref<1x1x32x96xbf16, #tpu.memory_space<vmem>>, vector<1x1x32x96xbf16>
    %53 = vector.shape_cast %52 : vector<1x1x32x96xbf16> to vector<32x96xbf16>
    %cst_23 = arith.constant dense<0.000000e+00> : vector<8x96xf32>
    %54 = tpu.matmul %51, %53, %cst_23 {dimension_numbers = #tpu.dot_dimension_numbers<[1], [0], [0], [1], [0, 0, 1, 1], [], []>} : vector<8x32xbf16>, vector<32x96xbf16>, vector<8x96xf32> -> vector<8x96xf32>
    %c0_24 = arith.constant 0 : index
    %c0_25 = arith.constant 0 : index
    %c0_26 = arith.constant 0 : index
    %c0_27 = arith.constant 0 : index
    %55 = vector.load %arg8[%c0_24, %c0_25, %c0_26, %c0_27] : memref<1x1x1x96xf32, #tpu.memory_space<vmem>>, vector<1x1x1x96xf32>
    %56 = vector.shape_cast %55 : vector<1x1x1x96xf32> to vector<1x96xf32>
    %57 = vector.broadcast %56 : vector<1x96xf32> to vector<8x96xf32>
    %58 = arith.addf %54, %57 : vector<8x96xf32>
    %59 = arith.truncf %58 : vector<8x96xf32> to vector<8x96xbf16>
    %60 = vector.extract_strided_slice %59 {offsets = [0, 0], sizes = [8, 8], strides = [1, 1]} : vector<8x96xbf16> to vector<8x8xbf16>
    %61 = vector.extract_strided_slice %59 {offsets = [0, 32], sizes = [8, 8], strides = [1, 1]} : vector<8x96xbf16> to vector<8x8xbf16>
    %62 = vector.extract_strided_slice %59 {offsets = [0, 64], sizes = [8, 8], strides = [1, 1]} : vector<8x96xbf16> to vector<8x8xbf16>
    %cst_28 = arith.constant dense<0.000000e+00> : vector<8x8xf32>
    %63 = tpu.matmul %60, %61, %cst_28 {dimension_numbers = #tpu.dot_dimension_numbers<[1], [1], [0], [0], [0, 0, 1, 0], [], []>} : vector<8x8xbf16>, vector<8x8xbf16>, vector<8x8xf32> -> vector<8x8xf32>
    %cst_29 = arith.constant 0.353553385 : f32
    %64 = vector.broadcast %cst_29 : f32 to vector<8x8xf32>
    %65 = arith.mulf %63, %64 : vector<8x8xf32>
    %66 = arith.addf %65, %50 : vector<8x8xf32>
    %cst_30 = arith.constant dense<0xFF800000> : vector<8xf32>
    %67 = vector.multi_reduction <maximumf>, %66, %cst_30 [1] : vector<8x8xf32> to vector<8xf32>
    %68 = vector.shape_cast %67 : vector<8xf32> to vector<8x1xf32>
    %69 = vector.broadcast %68 : vector<8x1xf32> to vector<8x8xf32>
    %70 = arith.subf %66, %69 : vector<8x8xf32>
    %71 = math.exp %70 : vector<8x8xf32>
    %cst_31 = arith.constant dense<0.000000e+00> : vector<8xf32>
    %72 = vector.multi_reduction <add>, %71, %cst_31 [1] : vector<8x8xf32> to vector<8xf32>
    %73 = vector.shape_cast %72 : vector<8xf32> to vector<8x1xf32>
    %74 = arith.truncf %71 : vector<8x8xf32> to vector<8x8xbf16>
    %cst_32 = arith.constant dense<0.000000e+00> : vector<8x8xf32>
    %75 = tpu.matmul %74, %62, %cst_32 {dimension_numbers = #tpu.dot_dimension_numbers<[1], [0], [0], [1], [0, 0, 1, 1], [], []>} : vector<8x8xbf16>, vector<8x8xbf16>, vector<8x8xf32> -> vector<8x8xf32>
    %76 = tpu.reciprocal %73 {approx = true} : vector<8x1xf32> -> vector<8x1xf32>
    %77 = vector.broadcast %76 : vector<8x1xf32> to vector<8x8xf32>
    %78 = arith.mulf %75, %77 : vector<8x8xf32>
    %c0_33 = arith.constant 0 : index
    %c0_34 = arith.constant 0 : index
    %79 = vector.load %arg21[%c0_33, %c0_34] : memref<8x32xf32, #tpu.memory_space<vmem>>, vector<8x8xf32>
    tpu.vector_store %arg21[%c0_33, %c0_34], %78 {strides = array<i32>} : memref<8x32xf32, #tpu.memory_space<vmem>>, vector<8x8xf32>,
    %80 = vector.extract_strided_slice %59 {offsets = [0, 8], sizes = [8, 8], strides = [1, 1]} : vector<8x96xbf16> to vector<8x8xbf16>
    %81 = vector.extract_strided_slice %59 {offsets = [0, 40], sizes = [8, 8], strides = [1, 1]} : vector<8x96xbf16> to vector<8x8xbf16>
    %82 = vector.extract_strided_slice %59 {offsets = [0, 72], sizes = [8, 8], strides = [1, 1]} : vector<8x96xbf16> to vector<8x8xbf16>
    %cst_35 = arith.constant dense<0.000000e+00> : vector<8x8xf32>
    %83 = tpu.matmul %80, %81, %cst_35 {dimension_numbers = #tpu.dot_dimension_numbers<[1], [1], [0], [0], [0, 0, 1, 0], [], []>} : vector<8x8xbf16>, vector<8x8xbf16>, vector<8x8xf32> -> vector<8x8xf32>
    %cst_36 = arith.constant 0.353553385 : f32
    %84 = vector.broadcast %cst_36 : f32 to vector<8x8xf32>
    %85 = arith.mulf %83, %84 : vector<8x8xf32>
    %86 = arith.addf %85, %50 : vector<8x8xf32>
    %cst_37 = arith.constant dense<0xFF800000> : vector<8xf32>
    %87 = vector.multi_reduction <maximumf>, %86, %cst_37 [1] : vector<8x8xf32> to vector<8xf32>
    %88 = vector.shape_cast %87 : vector<8xf32> to vector<8x1xf32>
    %89 = vector.broadcast %88 : vector<8x1xf32> to vector<8x8xf32>
    %90 = arith.subf %86, %89 : vector<8x8xf32>
    %91 = math.exp %90 : vector<8x8xf32>
    %cst_38 = arith.constant dense<0.000000e+00> : vector<8xf32>
    %92 = vector.multi_reduction <add>, %91, %cst_38 [1] : vector<8x8xf32> to vector<8xf32>
    %93 = vector.shape_cast %92 : vector<8xf32> to vector<8x1xf32>
    %94 = arith.truncf %91 : vector<8x8xf32> to vector<8x8xbf16>
    %cst_39 = arith.constant dense<0.000000e+00> : vector<8x8xf32>
    %95 = tpu.matmul %94, %82, %cst_39 {dimension_numbers = #tpu.dot_dimension_numbers<[1], [0], [0], [1], [0, 0, 1, 1], [], []>} : vector<8x8xbf16>, vector<8x8xbf16>, vector<8x8xf32> -> vector<8x8xf32>
    %96 = tpu.reciprocal %93 {approx = true} : vector<8x1xf32> -> vector<8x1xf32>
    %97 = vector.broadcast %96 : vector<8x1xf32> to vector<8x8xf32>
    %98 = arith.mulf %95, %97 : vector<8x8xf32>
    %c0_40 = arith.constant 0 : index
    %c8 = arith.constant 8 : index
    %99 = vector.load %arg21[%c0_40, %c8] : memref<8x32xf32, #tpu.memory_space<vmem>>, vector<8x8xf32>
    tpu.vector_store %arg21[%c0_40, %c8], %98 {strides = array<i32>} : memref<8x32xf32, #tpu.memory_space<vmem>>, vector<8x8xf32>,
    %100 = vector.extract_strided_slice %59 {offsets = [0, 16], sizes = [8, 8], strides = [1, 1]} : vector<8x96xbf16> to vector<8x8xbf16>
    %101 = vector.extract_strided_slice %59 {offsets = [0, 48], sizes = [8, 8], strides = [1, 1]} : vector<8x96xbf16> to vector<8x8xbf16>
    %102 = vector.extract_strided_slice %59 {offsets = [0, 80], sizes = [8, 8], strides = [1, 1]} : vector<8x96xbf16> to vector<8x8xbf16>
    %cst_41 = arith.constant dense<0.000000e+00> : vector<8x8xf32>
    %103 = tpu.matmul %100, %101, %cst_41 {dimension_numbers = #tpu.dot_dimension_numbers<[1], [1], [0], [0], [0, 0, 1, 0], [], []>} : vector<8x8xbf16>, vector<8x8xbf16>, vector<8x8xf32> -> vector<8x8xf32>
    %cst_42 = arith.constant 0.353553385 : f32
    %104 = vector.broadcast %cst_42 : f32 to vector<8x8xf32>
    %105 = arith.mulf %103, %104 : vector<8x8xf32>
    %106 = arith.addf %105, %50 : vector<8x8xf32>
    %cst_43 = arith.constant dense<0xFF800000> : vector<8xf32>
    %107 = vector.multi_reduction <maximumf>, %106, %cst_43 [1] : vector<8x8xf32> to vector<8xf32>
    %108 = vector.shape_cast %107 : vector<8xf32> to vector<8x1xf32>
    %109 = vector.broadcast %108 : vector<8x1xf32> to vector<8x8xf32>
    %110 = arith.subf %106, %109 : vector<8x8xf32>
    %111 = math.exp %110 : vector<8x8xf32>
    %cst_44 = arith.constant dense<0.000000e+00> : vector<8xf32>
    %112 = vector.multi_reduction <add>, %111, %cst_44 [1] : vector<8x8xf32> to vector<8xf32>
    %113 = vector.shape_cast %112 : vector<8xf32> to vector<8x1xf32>
    %114 = arith.truncf %111 : vector<8x8xf32> to vector<8x8xbf16>
    %cst_45 = arith.constant dense<0.000000e+00> : vector<8x8xf32>
    %115 = tpu.matmul %114, %102, %cst_45 {dimension_numbers = #tpu.dot_dimension_numbers<[1], [0], [0], [1], [0, 0, 1, 1], [], []>} : vector<8x8xbf16>, vector<8x8xbf16>, vector<8x8xf32> -> vector<8x8xf32>
    %116 = tpu.reciprocal %113 {approx = true} : vector<8x1xf32> -> vector<8x1xf32>
    %117 = vector.broadcast %116 : vector<8x1xf32> to vector<8x8xf32>
    %118 = arith.mulf %115, %117 : vector<8x8xf32>
    %c0_46 = arith.constant 0 : index
    %c16 = arith.constant 16 : index
    %119 = vector.load %arg21[%c0_46, %c16] : memref<8x32xf32, #tpu.memory_space<vmem>>, vector<8x8xf32>
    tpu.vector_store %arg21[%c0_46, %c16], %118 {strides = array<i32>} : memref<8x32xf32, #tpu.memory_space<vmem>>, vector<8x8xf32>,
    %120 = vector.extract_strided_slice %59 {offsets = [0, 24], sizes = [8, 8], strides = [1, 1]} : vector<8x96xbf16> to vector<8x8xbf16>
    %121 = vector.extract_strided_slice %59 {offsets = [0, 56], sizes = [8, 8], strides = [1, 1]} : vector<8x96xbf16> to vector<8x8xbf16>
    %122 = vector.extract_strided_slice %59 {offsets = [0, 88], sizes = [8, 8], strides = [1, 1]} : vector<8x96xbf16> to vector<8x8xbf16>
    %cst_47 = arith.constant dense<0.000000e+00> : vector<8x8xf32>
    %123 = tpu.matmul %120, %121, %cst_47 {dimension_numbers = #tpu.dot_dimension_numbers<[1], [1], [0], [0], [0, 0, 1, 0], [], []>} : vector<8x8xbf16>, vector<8x8xbf16>, vector<8x8xf32> -> vector<8x8xf32>
    %cst_48 = arith.constant 0.353553385 : f32
    %124 = vector.broadcast %cst_48 : f32 to vector<8x8xf32>
    %125 = arith.mulf %123, %124 : vector<8x8xf32>
    %126 = arith.addf %125, %50 : vector<8x8xf32>
    %cst_49 = arith.constant dense<0xFF800000> : vector<8xf32>
    %127 = vector.multi_reduction <maximumf>, %126, %cst_49 [1] : vector<8x8xf32> to vector<8xf32>
    %128 = vector.shape_cast %127 : vector<8xf32> to vector<8x1xf32>
    %129 = vector.broadcast %128 : vector<8x1xf32> to vector<8x8xf32>
    %130 = arith.subf %126, %129 : vector<8x8xf32>
    %131 = math.exp %130 : vector<8x8xf32>
    %cst_50 = arith.constant dense<0.000000e+00> : vector<8xf32>
    %132 = vector.multi_reduction <add>, %131, %cst_50 [1] : vector<8x8xf32> to vector<8xf32>
    %133 = vector.shape_cast %132 : vector<8xf32> to vector<8x1xf32>
    %134 = arith.truncf %131 : vector<8x8xf32> to vector<8x8xbf16>
    %cst_51 = arith.constant dense<0.000000e+00> : vector<8x8xf32>
    %135 = tpu.matmul %134, %122, %cst_51 {dimension_numbers = #tpu.dot_dimension_numbers<[1], [0], [0], [1], [0, 0, 1, 1], [], []>} : vector<8x8xbf16>, vector<8x8xbf16>, vector<8x8xf32> -> vector<8x8xf32>
    %136 = tpu.reciprocal %133 {approx = true} : vector<8x1xf32> -> vector<8x1xf32>
    %137 = vector.broadcast %136 : vector<8x1xf32> to vector<8x8xf32>
    %138 = arith.mulf %135, %137 : vector<8x8xf32>
    %c0_52 = arith.constant 0 : index
    %c24 = arith.constant 24 : index
    %139 = vector.load %arg21[%c0_52, %c24] : memref<8x32xf32, #tpu.memory_space<vmem>>, vector<8x8xf32>
    tpu.vector_store %arg21[%c0_52, %c24], %138 {strides = array<i32>} : memref<8x32xf32, #tpu.memory_space<vmem>>, vector<8x8xf32>,
    %c0_53 = arith.constant 0 : index
    %c0_54 = arith.constant 0 : index
    %140 = vector.load %arg21[%c0_53, %c0_54] : memref<8x32xf32, #tpu.memory_space<vmem>>, vector<8x32xf32>
    %141 = arith.truncf %140 : vector<8x32xf32> to vector<8x32xbf16>
    %c0_55 = arith.constant 0 : index
    %c0_56 = arith.constant 0 : index
    %c0_57 = arith.constant 0 : index
    %c0_58 = arith.constant 0 : index
    %142 = vector.load %arg9[%c0_55, %c0_56, %c0_57, %c0_58] : memref<1x1x32x32xbf16, #tpu.memory_space<vmem>>, vector<1x1x32x32xbf16>
    %143 = vector.shape_cast %142 : vector<1x1x32x32xbf16> to vector<32x32xbf16>
    %cst_59 = arith.constant dense<0.000000e+00> : vector<8x32xf32>
    %144 = tpu.matmul %141, %143, %cst_59 {dimension_numbers = #tpu.dot_dimension_numbers<[1], [0], [0], [1], [0, 0, 1, 1], [], []>} : vector<8x32xbf16>, vector<32x32xbf16>, vector<8x32xf32> -> vector<8x32xf32>
    %c0_60 = arith.constant 0 : index
    %c0_61 = arith.constant 0 : index
    %c0_62 = arith.constant 0 : index
    %c0_63 = arith.constant 0 : index
    %145 = vector.load %arg10[%c0_60, %c0_61, %c0_62, %c0_63] : memref<1x1x1x32xf32, #tpu.memory_space<vmem>>, vector<1x1x1x32xf32>
    %146 = vector.shape_cast %145 : vector<1x1x1x32xf32> to vector<1x32xf32>
    %147 = vector.broadcast %146 : vector<1x32xf32> to vector<8x32xf32>
    %148 = arith.addf %144, %147 : vector<8x32xf32>
    %149 = arith.addf %3, %148 : vector<8x32xf32>
    %c0_64 = arith.constant 0 : index
    %c0_65 = arith.constant 0 : index
    %c0_66 = arith.constant 0 : index
    %c0_67 = arith.constant 0 : index
    %150 = vector.load %arg15[%c0_64, %c0_65, %c0_66, %c0_67] : memref<1x1x1x32xf32, #tpu.memory_space<vmem>>, vector<1x1x1x32xf32>
    %151 = vector.shape_cast %150 : vector<1x1x1x32xf32> to vector<1x32xf32>
    %c0_68 = arith.constant 0 : index
    %c0_69 = arith.constant 0 : index
    %c0_70 = arith.constant 0 : index
    %c0_71 = arith.constant 0 : index
    %152 = vector.load %arg16[%c0_68, %c0_69, %c0_70, %c0_71] : memref<1x1x1x32xf32, #tpu.memory_space<vmem>>, vector<1x1x1x32xf32>
    %153 = vector.shape_cast %152 : vector<1x1x1x32xf32> to vector<1x32xf32>
    %cst_72 = arith.constant dense<0.000000e+00> : vector<8xf32>
    %154 = vector.multi_reduction <add>, %149, %cst_72 [1] : vector<8x32xf32> to vector<8xf32>
    %155 = vector.shape_cast %154 : vector<8xf32> to vector<8x1xf32>
    %cst_73 = arith.constant 3.200000e+01 : f32
    %156 = vector.broadcast %cst_73 : f32 to vector<8x1xf32>
    %157 = arith.divf %155, %156 : vector<8x1xf32>
    %158 = vector.broadcast %157 : vector<8x1xf32> to vector<8x32xf32>
    %159 = arith.subf %149, %158 : vector<8x32xf32>
    %160 = vector.broadcast %157 : vector<8x1xf32> to vector<8x32xf32>
    %161 = arith.subf %149, %160 : vector<8x32xf32>
    %162 = arith.mulf %159, %161 : vector<8x32xf32>
    %cst_74 = arith.constant dense<0.000000e+00> : vector<8xf32>
    %163 = vector.multi_reduction <add>, %162, %cst_74 [1] : vector<8x32xf32> to vector<8xf32>
    %164 = vector.shape_cast %163 : vector<8xf32> to vector<8x1xf32>
    %cst_75 = arith.constant 3.200000e+01 : f32
    %165 = vector.broadcast %cst_75 : f32 to vector<8x1xf32>
    %166 = arith.divf %164, %165 : vector<8x1xf32>
    %167 = vector.broadcast %157 : vector<8x1xf32> to vector<8x32xf32>
    %168 = arith.subf %149, %167 : vector<8x32xf32>
    %cst_76 = arith.constant 9.99999974E-6 : f32
    %169 = vector.broadcast %cst_76 : f32 to vector<8x1xf32>
    %170 = arith.addf %166, %169 : vector<8x1xf32>
    %171 = math.rsqrt %170 : vector<8x1xf32>
    %172 = vector.broadcast %171 : vector<8x1xf32> to vector<8x32xf32>
    %173 = arith.mulf %168, %172 : vector<8x32xf32>
    %174 = vector.broadcast %151 : vector<1x32xf32> to vector<8x32xf32>
    %175 = arith.mulf %173, %174 : vector<8x32xf32>
    %176 = vector.broadcast %153 : vector<1x32xf32> to vector<8x32xf32>
    %177 = arith.addf %175, %176 : vector<8x32xf32>
    %178 = arith.truncf %177 : vector<8x32xf32> to vector<8x32xbf16>
    %c0_77 = arith.constant 0 : index
    %c0_78 = arith.constant 0 : index
    %c0_79 = arith.constant 0 : index
    %c0_80 = arith.constant 0 : index
    %179 = vector.load %arg11[%c0_77, %c0_78, %c0_79, %c0_80] : memref<1x1x32x64xbf16, #tpu.memory_space<vmem>>, vector<1x1x32x64xbf16>
    %180 = vector.shape_cast %179 : vector<1x1x32x64xbf16> to vector<32x64xbf16>
    %cst_81 = arith.constant dense<0.000000e+00> : vector<8x64xf32>
    %181 = tpu.matmul %178, %180, %cst_81 {dimension_numbers = #tpu.dot_dimension_numbers<[1], [0], [0], [1], [0, 0, 1, 1], [], []>} : vector<8x32xbf16>, vector<32x64xbf16>, vector<8x64xf32> -> vector<8x64xf32>
    %c0_82 = arith.constant 0 : index
    %c0_83 = arith.constant 0 : index
    %c0_84 = arith.constant 0 : index
    %c0_85 = arith.constant 0 : index
    %182 = vector.load %arg12[%c0_82, %c0_83, %c0_84, %c0_85] : memref<1x1x1x64xf32, #tpu.memory_space<vmem>>, vector<1x1x1x64xf32>
    %183 = vector.shape_cast %182 : vector<1x1x1x64xf32> to vector<1x64xf32>
    %184 = vector.broadcast %183 : vector<1x64xf32> to vector<8x64xf32>
    %185 = arith.addf %181, %184 : vector<8x64xf32>
    %cst_86 = arith.constant 0.000000e+00 : f32
    %186 = vector.broadcast %cst_86 : f32 to vector<8x64xf32>
    %187 = arith.maximumf %185, %186 : vector<8x64xf32>
    %188 = arith.truncf %187 : vector<8x64xf32> to vector<8x64xbf16>
    %c0_87 = arith.constant 0 : index
    %c0_88 = arith.constant 0 : index
    %c0_89 = arith.constant 0 : index
    %c0_90 = arith.constant 0 : index
    %189 = vector.load %arg13[%c0_87, %c0_88, %c0_89, %c0_90] : memref<1x1x64x32xbf16, #tpu.memory_space<vmem>>, vector<1x1x64x32xbf16>
    %190 = vector.shape_cast %189 : vector<1x1x64x32xbf16> to vector<64x32xbf16>
    %cst_91 = arith.constant dense<0.000000e+00> : vector<8x32xf32>
    %191 = tpu.matmul %188, %190, %cst_91 {dimension_numbers = #tpu.dot_dimension_numbers<[1], [0], [0], [1], [0, 0, 1, 1], [], []>} : vector<8x64xbf16>, vector<64x32xbf16>, vector<8x32xf32> -> vector<8x32xf32>
    %c0_92 = arith.constant 0 : index
    %c0_93 = arith.constant 0 : index
    %c0_94 = arith.constant 0 : index
    %c0_95 = arith.constant 0 : index
    %192 = vector.load %arg14[%c0_92, %c0_93, %c0_94, %c0_95] : memref<1x1x1x32xf32, #tpu.memory_space<vmem>>, vector<1x1x1x32xf32>
    %193 = vector.shape_cast %192 : vector<1x1x1x32xf32> to vector<1x32xf32>
    %194 = vector.broadcast %193 : vector<1x32xf32> to vector<8x32xf32>
    %195 = arith.addf %191, %194 : vector<8x32xf32>
    %196 = arith.addf %177, %195 : vector<8x32xf32>
    %c0_96 = arith.constant 0 : index
    %c0_97 = arith.constant 0 : index
    %c0_98 = arith.constant 0 : index
    %c0_99 = arith.constant 0 : index
    %197 = vector.load %arg17[%c0_96, %c0_97, %c0_98, %c0_99] : memref<1x1x1x32xf32, #tpu.memory_space<vmem>>, vector<1x1x1x32xf32>
    %198 = vector.shape_cast %197 : vector<1x1x1x32xf32> to vector<1x32xf32>
    %c0_100 = arith.constant 0 : index
    %c0_101 = arith.constant 0 : index
    %c0_102 = arith.constant 0 : index
    %c0_103 = arith.constant 0 : index
    %199 = vector.load %arg18[%c0_100, %c0_101, %c0_102, %c0_103] : memref<1x1x1x32xf32, #tpu.memory_space<vmem>>, vector<1x1x1x32xf32>
    %200 = vector.shape_cast %199 : vector<1x1x1x32xf32> to vector<1x32xf32>
    %cst_104 = arith.constant dense<0.000000e+00> : vector<8xf32>
    %201 = vector.multi_reduction <add>, %196, %cst_104 [1] : vector<8x32xf32> to vector<8xf32>
    %202 = vector.shape_cast %201 : vector<8xf32> to vector<8x1xf32>
    %cst_105 = arith.constant 3.200000e+01 : f32
    %203 = vector.broadcast %cst_105 : f32 to vector<8x1xf32>
    %204 = arith.divf %202, %203 : vector<8x1xf32>
    %205 = vector.broadcast %204 : vector<8x1xf32> to vector<8x32xf32>
    %206 = arith.subf %196, %205 : vector<8x32xf32>
    %207 = vector.broadcast %204 : vector<8x1xf32> to vector<8x32xf32>
    %208 = arith.subf %196, %207 : vector<8x32xf32>
    %209 = arith.mulf %206, %208 : vector<8x32xf32>
    %cst_106 = arith.constant dense<0.000000e+00> : vector<8xf32>
    %210 = vector.multi_reduction <add>, %209, %cst_106 [1] : vector<8x32xf32> to vector<8xf32>
    %211 = vector.shape_cast %210 : vector<8xf32> to vector<8x1xf32>
    %cst_107 = arith.constant 3.200000e+01 : f32
    %212 = vector.broadcast %cst_107 : f32 to vector<8x1xf32>
    %213 = arith.divf %211, %212 : vector<8x1xf32>
    %214 = vector.broadcast %204 : vector<8x1xf32> to vector<8x32xf32>
    %215 = arith.subf %196, %214 : vector<8x32xf32>
    %cst_108 = arith.constant 9.99999974E-6 : f32
    %216 = vector.broadcast %cst_108 : f32 to vector<8x1xf32>
    %217 = arith.addf %213, %216 : vector<8x1xf32>
    %218 = math.rsqrt %217 : vector<8x1xf32>
    %219 = vector.broadcast %218 : vector<8x1xf32> to vector<8x32xf32>
    %220 = arith.mulf %215, %219 : vector<8x32xf32>
    %221 = vector.broadcast %198 : vector<1x32xf32> to vector<8x32xf32>
    %222 = arith.mulf %220, %221 : vector<8x32xf32>
    %223 = vector.broadcast %200 : vector<1x32xf32> to vector<8x32xf32>
    %224 = arith.addf %222, %223 : vector<8x32xf32>
    %c0_109 = arith.constant 0 : index
    %c0_110 = arith.constant 0 : index
    %225 = vector.load %arg20[%c0_109, %c0_110] : memref<8x32xf32, #tpu.memory_space<vmem>>, vector<8x32xf32>
    tpu.vector_store %arg20[%c0_109, %c0_110], %224 {strides = array<i32>} : memref<8x32xf32, #tpu.memory_space<vmem>>, vector<8x32xf32>,
    %c1_i32_111 = arith.constant 1 : i32
    %226 = arith.cmpi eq, %arg1, %c1_i32_111 : i32
    %227 = arith.extui %226 : i1 to i32
    %c0_i32_112 = arith.constant 0 : i32
    %228 = arith.cmpi ne, %227, %c0_i32_112 : i32
    scf.if %228 {
      %c0_113 = arith.constant 0 : index
      %c0_114 = arith.constant 0 : index
      %c0_115 = arith.constant 0 : index
      %229 = vector.load %arg19[%c0_113, %c0_114, %c0_115] : memref<1x8x32xf32, #tpu.memory_space<vmem>>, vector<1x8x32xf32>
      %230 = vector.shape_cast %229 : vector<1x8x32xf32> to vector<8x32xf32>
      %231 = vector.shape_cast %224 : vector<8x32xf32> to vector<1x8x32xf32>
      tpu.vector_store %arg19[%c0_113, %c0_114, %c0_115], %231 {strides = array<i32>} : memref<1x8x32xf32, #tpu.memory_space<vmem>>, vector<1x8x32xf32>,
    } else {
    }
    return
  }
  func.func @transform_0(%arg0: i32, %arg1: i32) -> (i32, i32) {
    %c0_i32 = arith.constant 0 : i32
    %c0_i32_0 = arith.constant 0 : i32
    %c0_i32_1 = arith.constant 0 : i32
    return %c0_i32, %c0_i32_0 : i32, i32
  }
  func.func @transform_1(%arg0: i32, %arg1: i32) -> (i32, i32) {
    %c0_i32 = arith.constant 0 : i32
    %c0_i32_0 = arith.constant 0 : i32
    %c0_i32_1 = arith.constant 0 : i32
    return %c0_i32, %c0_i32_0 : i32, i32
  }
  func.func @transform_2(%arg0: i32, %arg1: i32) -> (i32, i32) {
    %c0_i32 = arith.constant 0 : i32
    %c0_i32_0 = arith.constant 0 : i32
    %c0_i32_1 = arith.constant 0 : i32
    return %c0_i32, %c0_i32_0 : i32, i32
  }
  func.func @transform_3(%arg0: i32, %arg1: i32) -> (i32, i32) {
    %c0_i32 = arith.constant 0 : i32
    %c0_i32_0 = arith.constant 0 : i32
    %c0_i32_1 = arith.constant 0 : i32
    return %c0_i32, %c0_i32_0 : i32, i32
  }
  func.func @transform_4(%arg0: i32, %arg1: i32) -> (i32, i32) {
    %c0_i32 = arith.constant 0 : i32
    %c0_i32_0 = arith.constant 0 : i32
    %c0_i32_1 = arith.constant 0 : i32
    return %c0_i32, %c0_i32_0 : i32, i32
  }
  func.func @transform_5(%arg0: i32, %arg1: i32) -> (i32, i32, i32, i32) {
    %c0_i32 = arith.constant 0 : i32
    %c0_i32_0 = arith.constant 0 : i32
    %c0_i32_1 = arith.constant 0 : i32
    return %arg0, %arg1, %c0_i32, %c0_i32_0 : i32, i32, i32, i32
  }
  func.func @transform_6(%arg0: i32, %arg1: i32) -> (i32, i32, i32, i32) {
    %c0_i32 = arith.constant 0 : i32
    %c0_i32_0 = arith.constant 0 : i32
    %c0_i32_1 = arith.constant 0 : i32
    return %arg0, %arg1, %c0_i32, %c0_i32_0 : i32, i32, i32, i32
  }
  func.func @transform_7(%arg0: i32, %arg1: i32) -> (i32, i32, i32, i32) {
    %c0_i32 = arith.constant 0 : i32
    %c0_i32_0 = arith.constant 0 : i32
    %c0_i32_1 = arith.constant 0 : i32
    return %arg0, %arg1, %c0_i32, %c0_i32_0 : i32, i32, i32, i32
  }
  func.func @transform_8(%arg0: i32, %arg1: i32) -> (i32, i32, i32, i32) {
    %c0_i32 = arith.constant 0 : i32
    %c0_i32_0 = arith.constant 0 : i32
    %c0_i32_1 = arith.constant 0 : i32
    return %arg0, %arg1, %c0_i32, %c0_i32_0 : i32, i32, i32, i32
  }
  func.func @transform_9(%arg0: i32, %arg1: i32) -> (i32, i32, i32, i32) {
    %c0_i32 = arith.constant 0 : i32
    %c0_i32_0 = arith.constant 0 : i32
    %c0_i32_1 = arith.constant 0 : i32
    return %arg0, %arg1, %c0_i32, %c0_i32_0 : i32, i32, i32, i32
  }
  func.func @transform_10(%arg0: i32, %arg1: i32) -> (i32, i32, i32, i32) {
    %c0_i32 = arith.constant 0 : i32
    %c0_i32_0 = arith.constant 0 : i32
    %c0_i32_1 = arith.constant 0 : i32
    return %arg0, %arg1, %c0_i32, %c0_i32_0 : i32, i32, i32, i32
  }
  func.func @transform_11(%arg0: i32, %arg1: i32) -> (i32, i32, i32, i32) {
    %c0_i32 = arith.constant 0 : i32
    %c0_i32_0 = arith.constant 0 : i32
    %c0_i32_1 = arith.constant 0 : i32
    return %arg0, %arg1, %c0_i32, %c0_i32_0 : i32, i32, i32, i32
  }
  func.func @transform_12(%arg0: i32, %arg1: i32) -> (i32, i32, i32, i32) {
    %c0_i32 = arith.constant 0 : i32
    %c0_i32_0 = arith.constant 0 : i32
    %c0_i32_1 = arith.constant 0 : i32
    return %arg0, %arg1, %c0_i32, %c0_i32_0 : i32, i32, i32, i32
  }
  func.func @transform_13(%arg0: i32, %arg1: i32) -> (i32, i32, i32, i32) {
    %c0_i32 = arith.constant 0 : i32
    %c0_i32_0 = arith.constant 0 : i32
    %c0_i32_1 = arith.constant 0 : i32
    return %arg0, %arg1, %c0_i32, %c0_i32_0 : i32, i32, i32, i32
  }
  func.func @transform_14(%arg0: i32, %arg1: i32) -> (i32, i32, i32, i32) {
    %c0_i32 = arith.constant 0 : i32
    %c0_i32_0 = arith.constant 0 : i32
    %c0_i32_1 = arith.constant 0 : i32
    return %arg0, %arg1, %c0_i32, %c0_i32_0 : i32, i32, i32, i32
  }
  func.func @transform_15(%arg0: i32, %arg1: i32) -> (i32, i32, i32, i32) {
    %c0_i32 = arith.constant 0 : i32
    %c0_i32_0 = arith.constant 0 : i32
    %c0_i32_1 = arith.constant 0 : i32
    return %arg0, %arg1, %c0_i32, %c0_i32_0 : i32, i32, i32, i32
  }
  func.func @transform_16(%arg0: i32, %arg1: i32) -> (i32, i32, i32, i32) {
    %c0_i32 = arith.constant 0 : i32
    %c0_i32_0 = arith.constant 0 : i32
    %c0_i32_1 = arith.constant 0 : i32
    return %arg0, %arg1, %c0_i32, %c0_i32_0 : i32, i32, i32, i32
  }
  func.func @transform_17(%arg0: i32, %arg1: i32) -> (i32, i32, i32) {
    %c0_i32 = arith.constant 0 : i32
    %c0_i32_0 = arith.constant 0 : i32
    %c0_i32_1 = arith.constant 0 : i32
    return %arg0, %c0_i32, %c0_i32_0 : i32, i32, i32
  }
}

</mosaic_0001>

<bundles_post_ra>
// kernel: tpu_custom_call.1
= control target key start
LH: loop header
LB: loop body
LE: loop exit
PB: predicated region body
PF: predicated region fallthrough
CT: control target
= control target key end

     0   :  { %s2925_s0 = inlined_call_operand.vmem [shape: f32[8,32], index: 0, kind: input, shape index: {}]   ;;  %s2926_s1 = inlined_call_operand.vmem [shape: f32[8,1], index: 1, kind: input, shape index: {}]   ;;  %s2927_s2 = inlined_call_operand.hbm [shape: f32[1,8], index: 2, kind: input, shape index: {}]   ;;  %s2928_s3 = inlined_call_operand.vmem [shape: f32[8,1], index: 3, kind: input, shape index: {}]   ;;  %s2929_s4 = inlined_call_operand.hbm [shape: f32[1,8], index: 4, kind: input, shape index: {}]   ;;  %s2930_s5 = inlined_call_operand.vmem [shape: bf16[2,2,32,96], index: 5, kind: input, shape index: {}]   ;;  %s2931_s6 = inlined_call_operand.vmem [shape: f32[2,2,1,96], index: 6, kind: input, shape index: {}]   ;;  %s2932_s7 = inlined_call_operand.vmem [shape: bf16[2,2,32,32], index: 7, kind: input, shape index: {}]   ;;  %s2933_s8 = inlined_call_operand.vmem [shape: f32[2,2,1,32], index: 8, kind: input, shape index: {}]   ;;  %s2934_s9 = inlined_call_operand.vmem [shape: bf16[2,2,32,64], index: 9, kind: input, shape index: {}]   ;;  %s2935_s10 = inlined_call_operand.vmem [shape: f32[2,2,1,64], index: 10, kind: input, shape index: {}]   ;;  %s2936_s11 = inlined_call_operand.vmem [shape: bf16[2,2,64,32], index: 11, kind: input, shape index: {}]   ;;  %s2937_s12 = inlined_call_operand.vmem [shape: f32[2,2,1,32], index: 12, kind: input, shape index: {}]   ;;  %s2938_s13 = inlined_call_operand.vmem [shape: f32[2,2,1,32], index: 13, kind: input, shape index: {}]   ;;  %s2939_s14 = inlined_call_operand.hbm [shape: f32[2,2,1,32], index: 14, kind: input, shape index: {}]   ;;  %s2940_s15 = inlined_call_operand.hbm [shape: f32[2,2,1,32], index: 15, kind: input, shape index: {}]   ;;  %s2941_s16 = inlined_call_operand.hbm [shape: f32[2,2,1,32], index: 16, kind: input, shape index: {}]   ;;  %s2942_s17 = inlined_call_operand.hbm [shape: f32[2,8,32], index: 17, kind: output, shape index: {}]  }
   0x1   :  { %2962 = sst [smem:[#allocation33_spill]] %s2925_s0 }
   0x2   :  { %2963 = sst [smem:[#allocation34_spill]] %s2926_s1 }
   0x3   :  { %2964 = sst [smem:[#allocation35_spill]] %s2927_s2 }
   0x4   :  { %2965 = sst [smem:[#allocation36_spill]] %s2928_s3 }
   0x5   :  { %2966 = sst [smem:[#allocation37_spill]] %s2929_s4 }
   0x6   :  { %2967 = sst [smem:[#allocation38_spill]] %s2930_s5 }
   0x7   :  { %2968 = sst [smem:[#allocation39_spill]] %s2931_s6 }
   0x8   :  { %2969 = sst [smem:[#allocation40_spill]] %s2932_s7 }
   0x9   :  { %2970 = sst [smem:[#allocation41_spill]] %s2933_s8 }
   0xa   :  { %2971 = sst [smem:[#allocation42_spill]] %s2934_s9 }
   0xb   :  { %2972 = sst [smem:[#allocation43_spill]] %s2935_s10 }
   0xc   :  { %2973 = sst [smem:[#allocation44_spill]] %s2936_s11 }
   0xd   :  { %2974 = sst [smem:[#allocation45_spill]] %s2937_s12 }
   0xe   :  { %2975 = sst [smem:[#allocation46_spill]] %s2938_s13 }
   0xf   :  { %2976 = sst [smem:[#allocation47_spill]] %s2939_s14 }
  0x10   :  { %2977 = sst [smem:[#allocation48_spill]] %s2940_s15 }
  0x11   :  { %2978 = sst [smem:[#allocation49_spill]] %s2941_s16 }
  0x12   :  { %2979 = sst [smem:[#allocation50_spill]] %s2942_s17 }
  0x13   :  { %22 = vsyncpa [#allocation5], 0 }
  0x14   :  { %23 = vsyncpa [#allocation8], 0 }
  0x15   :  { %24 = vsyncpa [#allocation6], 0 }
  0x16   :  { %26 = vsyncpa [#allocation6 + $0x1], 0  ;;  %s2502_s24 = smov 0   ;;  %s2504_s25 = smov 0  }
  0x17   :  { %s2506_s26 = smov 0   ;;  %s2508_s27 = smov 0  }
  0x18   :  { %s2510_s28 = smov 0   ;;  %s2512_s29 = smov 0  }
  0x19   :  { %s2514_s0 = smov 0   ;;  %s2516_s30 = smov 0  }
  0x1a   :  { %s2518_s18 = smov 0   ;;  %s2520_s19 = smov 0  }
  0x1b   :  { %s2522_s1 = smov 0  }
  0x1c LB: > { %2980 = sst [smem:[#allocation17_spill]] %s2350_s24  ;;  %s2556_s20 = sadd.s32 4294967295, %s2390_s1   ;;  %s2390_s1 = sphi %s2522_s1, %s32_s1   ;;  %s2386_s19 = sphi %s2520_s19, %s3054_s19   ;;  %s2382_s18 = sphi %s2518_s18, %s3053_s18   ;;  %s2378_s30 = sphi %s2516_s30, %s3052_s30   ;;  %s2374_s0 = sphi %s2514_s0, %s3051_s0   ;;  %s2370_s29 = sphi %s2512_s29, %s3050_s29   ;;  %s2366_s28 = sphi %s2510_s28, %s3049_s28   ;;  %s2362_s27 = sphi %s2508_s27, %s3048_s27   ;;  %s2358_s26 = sphi %s2506_s26, %s3047_s26   ;;  %s2354_s25 = sphi %s2504_s25, %s3046_s25   ;;  %s2350_s24 = sphi %s2502_s24, %s3045_s24  }
  0x1d   : > { %2981 = sst [smem:[#allocation18_spill]] %s2354_s25  ;;  %s1828_s21 = sadd.s32 4294967294, %s2390_s1  }
  0x1e   : > { %2982 = sst [smem:[#allocation19_spill]] %s2358_s26  ;;  %p417_p0 = scmp.ne.s32.totalorder %s2370_s29, %s2366_s28 }
  0x1f   : > { %2983 = sst [smem:[#allocation20_spill]] %s2366_s28  ;;  %p423_p1 = scmp.ne.s32.totalorder %s2366_s28, %s2362_s27 }
  0x20   : > { %2984 = sst [smem:[#allocation21_spill]] %s2370_s29  ;;  %p424_p2 = scmp.eq.s32.totalorder %s2556_s20, 0 }
  0x21   : > { %2985 = sst [smem:[#allocation22_spill]] %s2374_s0  ;;  %p502_p3 = scmp.ne.s32.totalorder %s2358_s26, %s2354_s25 }
  0x22   : > { %2986 = sst [smem:[#allocation23_spill]] %s2378_s30  ;;  %p2569_p4 = por %p424_p2, %p423_p1 }
  0x23   : > { %2987 = sst [smem:[#allocation24_spill]] %s2382_s18  ;;  %p503_p5 = scmp.eq.s32.totalorder %s2556_s20, 3 }
  0x24   : > { %2988 = sst [smem:[#allocation25_spill]] %s2386_s19  ;;  %p508_p6 = scmp.ne.s32.totalorder %s2354_s25, %s2350_s24 }
  0x25   : > { %s2989_s17 = scalar_select %p2569_p4, 1, 0 }
  0x26   : > { %p509_p7 = scmp.eq.s32.totalorder %s1828_s21, 3  ;;  %p2576_p8 = por %p503_p5, %p502_p3 }
  0x27   : > { %2990 = sst [smem:[#allocation26_spill]] %s2989_s17  ;;  %p1829_p9 = scmp.ge.s32.totalorder %s2390_s1, 1 }
  0x28   : > { %s2991_s3 = scalar_select %p2576_p8, 1, 0 }
  0x29   : > { %p2581_p10 = por %p509_p7, %p508_p6  ;;  %p516_p11 = scmp.lt.s32.totalorder %s2390_s1, 5 }
  0x2a   : > { %2992 = sst [smem:[#allocation27_spill]] %s2991_s3  ;;  %s2392_s24 = smov [#allocation4]  }
  0x2b   : > { %s2993_s27 = scalar_select %p2581_p10, 1, 0 }
  0x2c   : > { %s2995_s2 = sld [smem:[#allocation35_spill]]  ;;  %p2589_p12 = pnand %p1829_p9, %p516_p11 }
  0x2d   : > { %2994 = sst [smem:[#allocation28_spill]] %s2993_s27  ;;  %s536_s27 = sshll.u32 %s2392_s24, 4  ;;  %s537_s27 = int_to_ptr.vmem [resolvable:$true] %s536_s27 }
  0x2e   : > { %p1941_p13 = pneg %p2589_p12  ;;  %s41_s23 = sadd.s32 1, %s2382_s18 }
  0x2f   : > { %p42_p3 = scmp.ge.s32.totalorder %s41_s23, 2  ;;  %p418_p5 = scmp.eq.s32.totalorder %s2390_s1, 0 }
  0x30   : > { %p2597_p1 = pnand %p1941_p13, %p424_p2  ;;  %p1964_p6 = scmp.lt.s32.totalorder %s2390_s1, 4 }
  0x31   : > { %s3056_s23 = smov (%p42_p3, %s41_s23), 0  ;;  %p2615_p7 = por %p418_p5, %p417_p0 }
  0x32   : > { %s534_s11 = sshll.u32 %s2995_s2, 4  ;;  %s44_s2 = sadd.s32 1, %s2386_s19  ;;  %s535_s11 = int_to_ptr.hbm [resolvable:$true] %s534_s11 }
  0x33   : > { %1944 = dma.hbm_to_vmem [thread:$0]  (!%p2597_p1), %s535_s11, 16, %s537_s27, [#allocation5]  }
  0x34   : > { %2998 = sst [smem:[#allocation29_spill]] %s3056_s23  ;;  %s3058_s2 = smov (!%p42_p3, %s44_s2), %s2386_s19 }
  0x35   : > { %s406_s24 = ssub.s32 %s2382_s18, %s3056_s23  ;;  %p46_p9 = scmp.ge.s32.totalorder %s3058_s2, 2 }
  0x36   : > { %s660_s11 = sand.u32 1, %s2390_s1   ;;  %s2621_s27 = sand.u32 1, %s2370_s29  }
  0x37   : > { %s3060_s2 = smov (%p46_p9, %s3058_s2), 0  ;;  %s1833_s13 = sshll.u32 %s2386_s19, 1 }
  0x38   : > { %3000 = sst [smem:[#allocation30_spill]] %s3060_s2  ;;  %s405_s12 = ssub.s32 %s2386_s19, %s3060_s2 }
  0x39   : > { %s2629_s10 = sadd.s32 %s2382_s18, %s1833_s13  ;;  %s407_s23 = sor.u32 %s406_s24, %s405_s12 }
  0x3a   : > { %p490_p0 = scmp.eq.s32.totalorder %s405_s12, 0  ;;  %p408_p11 = scmp.eq.s32.totalorder %s407_s23, 0 }
  0x3b   : > { %s3001_s14 = sld [smem:[#allocation47_spill]]  ;;  %s3002_s8 = sadd.s32 1, %s2358_s26 }
  0x3c   : > { %s2638_s6 = scalar_select %p490_p0, %s2358_s26, %s3002_s8  }
  0x3d   : > { %s3004_s0 = sadd.s32 1, %s2370_s29  ;;  %s663_s17 = scalar_lea.vmem [#allocation9], %s2621_s27 }
  0x3e   : > { %3003 = sst [smem:[#allocation31_spill]] %s2638_s6  ;;  %s672_s2 = sshll.u32 %s663_s17, 4  ;;  %s673_s2 = int_to_ptr.vmem [resolvable:$true] %s672_s2 }
  0x3f   : > { %s2643_s30 = scalar_select %p408_p11, %s2370_s29, %s3004_s0  }
  0x40   : > { %p2650_p13 = pnand %p1964_p6, %p2615_p7  ;;  %s3007_s15 = sld [smem:[#allocation48_spill]] }
  0x41   : > { %s668_s5 = scalar_lea.hbm %s3001_s14, %s2629_s10  ;;  %3005 = sst [smem:[#allocation32_spill]] %s2643_s30 }
  0x42   : > { %s670_s25 = sshll.u32 %s668_s5, 4  ;;  %s682_s5 = scalar_lea.vmem [#allocation10], %s2621_s27  ;;  %s671_s25 = int_to_ptr.hbm [resolvable:$true] %s670_s25 }
  0x43   : > { %s691_s13 = sshll.u32 %s682_s5, 4  ;;  %s661_s0 = scalar_lea.sflag [#allocation5], %s660_s11  ;;  %s692_s13 = int_to_ptr.vmem [resolvable:$true] %s691_s13 }
  0x44   : > { %1951 = dma.hbm_to_vmem [thread:$0]  (!%p2650_p13), %s671_s25, 16, %s673_s2, %s661_s0  }
  0x45   : > { %s3008_s4 = sld [smem:[#allocation37_spill]]  ;;  %s2393_s7 = smov [#allocation7]  }
  0x46   : > { %s687_s8 = scalar_lea.hbm %s3007_s15, %s2629_s10  ;;  %s551_s9 = sshll.u32 %s2393_s7, 4  ;;  %s552_s9 = int_to_ptr.vmem [resolvable:$true] %s551_s9 }
  0x47   : > { %s689_s17 = sshll.u32 %s687_s8, 4  ;;  %s3009_s16 = sld [smem:[#allocation49_spill]]  ;;  %s690_s17 = int_to_ptr.hbm [resolvable:$true] %s689_s17 }
  0x48   : > { %1954 = dma.hbm_to_vmem [thread:$0]  (!%p2650_p13), %s690_s17, 16, %s692_s13, %s661_s0  }
  0x49   : > { %s701_s2 = scalar_lea.vmem [#allocation11], %s2621_s27 }
  0x4a   : > { %s710_s25 = sshll.u32 %s701_s2, 4  ;;  %s711_s25 = int_to_ptr.vmem [resolvable:$true] %s710_s25 }
  0x4b   : > { %s549_s24 = sshll.u32 %s3008_s4, 4  ;;  %719 = sbr.rel (%p2589_p12) target bundleno = 1892 (0x764), region = 88  ;;  %s550_s24 = int_to_ptr.hbm [resolvable:$true] %s549_s24 }
  0x4c   : > { %1947 = dma.hbm_to_vmem [thread:$0]  (!%p2597_p1), %s550_s24, 16, %s552_s9, [#allocation8]  }
  0x4d   : > { %s706_s11 = scalar_lea.hbm %s3009_s16, %s2629_s10 }
  0x4e   : > { %s708_s14 = sshll.u32 %s706_s11, 4  ;;  %s709_s14 = int_to_ptr.hbm [resolvable:$true] %s708_s14 }
  0x4f   : > { %1957 = dma.hbm_to_vmem [thread:$0]  (!%p2650_p13), %s709_s14, 16, %s711_s25, %s661_s0  }
  0x50   : > { %2333 = dma.done.wait (%p424_p2), [#allocation5], 16  }
  0x51   : > { %2335 = vsyncadd (%p424_p2), [#allocation5], 4294967280 }
  0x52   : > { %2337 = dma.done.wait (%p424_p2), [#allocation8], 16  }
  0x53   : > { %2339 = vsyncadd (%p424_p2), [#allocation8], 4294967280  ;;  %s731_s22 = sand.u32 1, %s2556_s20   ;;  %s2687_s14 = sand.u32 1, %s2366_s28  }
  0x54   : > { %s732_s21 = scalar_lea.sflag [#allocation5], %s731_s22 }
  0x55   : > { %2341 = dma.done.wait (%p2569_p4), %s732_s21, 48  }
  0x56   : > { %2343 = vsyncadd (%p2569_p4), %s732_s21, 4294967248  ;;  %s3011_s12 = sld [smem:[#allocation18_spill]]  ;;  %s752_s2 = scalar_lea.vmem [#allocation11], %s2687_s14 }
  0x57   : > { %s3012_s13 = sld [smem:[#allocation23_spill]] }
  0x58   : > { %s3013_s17 = sld [smem:[#allocation22_spill]] }
  0x59   : > { %s3016_s4 = sld [smem:[#allocation38_spill]] }
  0x5a   : > { %s3017_s18 = sld [smem:[#allocation40_spill]] }
  0x5b   : > { %s3018_s8 = sld [smem:[#allocation42_spill]] }
  0x5c   : > { %s2956_s0 = sand.u32 1, %s3011_s12   ;;  %s3019_s25 = sld [smem:[#allocation43_spill]] }
  0x5d   : > { %p882_p2 = scmp.lt.s32.totalorder %s3012_s13, 1  ;;  %s2698_s20 = sshll.u32 %s2956_s0, 3 }
  0x5e   : > { %p884_p12 = scmp.lt.s32.totalorder %s3013_s17, 1  ;;  %s3021_s19 = sld [smem:[#allocation46_spill]] }
  0x5f   : > { %s3062_s13 = smov (!%p882_p2, %s3012_s13), 1  ;;  %p1857_p4 = scmp.ne.s32.totalorder %s3013_s17, 0 }
  0x60   : > { %s885_s3 = scalar_select %p884_p12, %s3013_s17, 1 }
  0x61   : > { %s1841_s23 = sshll.u32 %s3062_s13, 3  ;;  %s1843_s24 = sshll.u32 %s3062_s13, 1 }
  0x62   : > { %s1840_s7 = sshll.u32 %s885_s3, 2  ;;  %s2703_s9 = sadd.s32 %s1843_s24, %s885_s3 }
  0x63   : > { %s888_s5 = sadd.s32 %s1841_s23, %s1840_s7  ;;  %s929_s29 = scalar_lea.vmem %s3019_s25, %s2703_s9 }
  0x64   : > { %s1842_s10 = sshll.u32 %s888_s5, 2  ;;  %s1852_s22 = sshll.u32 %s885_s3, 3 }
  0x65   : > { %s890_s15 = scalar_lea.vmem %s3016_s4, %s1842_s10  ;;  %s2719_s30 = scalar_lea.vmem %s3017_s18, %s1842_s10 }
  0x66   : > { %s2724_s11 = scalar_lea.vmem %s3018_s8, %s1842_s10  ;;  %s1853_s21 = sshll.u32 %s3062_s13, 4 }
  0x67   : > { %s936_s12 = sadd.s32 %s1853_s21, %s1852_s22  ;;  %s3020_s4 = sld [smem:[#allocation45_spill]] }
  0x68   : > { %s1854_s28 = sshll.u32 %s936_s12, 2  ;;  %s952_s6 = scalar_lea.vmem %s3021_s19, %s2703_s9 }
  0x69   : > { %s3022_s10 = sld [smem:[#allocation44_spill]]  ;;  %s743_s8 = scalar_lea.vmem [#allocation10], %s2687_s14 }
  0x6a   : > { %s881_s25 = scalar_lea.vmem [#allocation12], %s2698_s20  ;;  %s3023_s0 = sld [smem:[#allocation33_spill]] (!%p1857_p4) }
  0x6b   : > { %957 = sbr.rel (%p1857_p4) target bundleno = 114 (0x72), region = 112 }
  0x6d   : > { %s945_s24 = scalar_lea.vmem %s3020_s4, %s2703_s9 }
  0x6f   : > { %s2741_s7 = scalar_lea.vmem %s3022_s10, %s1854_s28 }
  0x70   : > { %v958_v0 = vld [vmem:[%s3023_s0] sm:$0xff]  ;;  %vm959_vm0 = vcmask 261120  }
  0x71   : > { %960 = vst.msk [vmem:[#allocation2] sm:$0xff] %vm959_vm0, %v958_v0 }
  0x72 PF: > { %v1916_v1 = vld [vmem:[%s890_s15 + $0x8] sm:$0xff]  ;;  %v1915_v2 = vld [vmem:[%s890_s15] sm:$0xff]  ;;  %vm1037_vm1 = vcmask 261120   ;;  %v2394_v5 = vmov 0   ;;  %s3024_s15 = sld [smem:[#allocation39_spill]]  ;;  %s2395_s5 = smov 104   ;;  %v963_v32 = vlaneseq }
  0x73   : > { %1047 = vmatpush.bf16.msra.mxu0 %v1916_v1  ;;  %2076 = vset.pattern.permute.xlu1 %v2394_v5  ;;  %s2396_s22 = smov 120   ;;  %s2397_s21 = smov 96   ;;  %vm1060_vm2 = vcmask 64512   ;;  %vm1097_vm4 = vcmask 1043456   ;;  %v974_v33 = vld [vmem:[#allocation4] sm:$0x1] }
  0x74   : > { %2077 = vset.pattern.permute.xlu2 %v2394_v5  ;;  %2078 = vset.pattern.permute.xlu0 %v2394_v5  ;;  %s2398_s12 = smov 80   ;;  %s2399_s27 = smov 72   ;;  %v964_v34 = vshrl.u32 %v963_v32, 7  ;;  %v966_v35 = vand.u32 127, %v963_v32  ;;  %vm975_vm5 = vcmp.gt.f32.partialorder %v974_v33, 0.0  ;;  %vm2404_vm12 = vmmov 1  }
  0x75   : > { %s2400_s4 = smov 88   ;;  %s3026_s19 = sld [smem:[#allocation36_spill]]  ;;  %v981_v37 = vsel %vm975_vm5, 1, %v2394_v5  ;;  %v2080_v38 = vld [vmem:[#allocation7] ss:$0 sm:$0xff]  ;;  %vm1307_vm5 = vcmask 261312  }
  0x76   : > { %s2401_s23 = smov 112   ;;  %s2402_s10 = smov 64   ;;  %v967_v36 = vsub.s32 %v964_v34, %v966_v35  ;;  %v982_v40 = vperm.slane %v981_v37, 0  ;;  %vm996_vm7 = vcmp.eq.s32.totalorder %v964_v34, %v966_v35  ;;  %v2405_v44 = vmov -1e+09  }
  0x77   : > { %1048 = vmatpush.bf16.msra.mxu0 %v1915_v2  ;;  %s2403_s13 = smov 56   ;;  %s3027_s26 = sld [smem:[#allocation34_spill]] }
  0x78   : > { %v2750_v3 = vld [vmem:[#allocation2] sm:$0xff]  ;;  %s3025_s17 = scalar_lea.vmem %s3024_s15, %s2703_s9  ;;  %s3028_s28 = sld [smem:[#allocation23_spill]]  ;;  %v969_v39 = vsub.s32 0, %v967_v36  ;;  %vm968_vm6 = vcmp.lt.s32.totalorder %v967_v36, 0  ;;  %vm983_vm9 = vcmp.eq.s32.totalorder %v982_v40, 1 }
  0x79   : > { %v1016_v4 = vpack.c.bf16 %v2750_v3, %v2750_v3  ;;  %v2079_v6 = vld [vmem:[%s3025_s17] ss:$0 sm:$0xff]  ;;  %s2407_s16 = smov 48   ;;  %s2408_s18 = smov 8  }
  0x7a   : > { %v970_v42 = vsel %vm968_vm6, %v969_v39, %v967_v36  ;;  %s3031_s3 = sld [smem:[#allocation41_spill]] }
  0x7b   : > { %1866 = vmatmul.msk.bf16.vlgmr.msra.gmra.mxu0 %vm1037_vm1, %v1016_v4  ;;  %v985_v13 = vld [vmem:[%s3026_s19] sm:$0xff]  ;;  %vm971_vm14 = vcmp.le.s32.totalorder %v970_v42, 100  ;;  %s2409_s19 = smov 16  }
  0x7d   : > { %v972_v20 = vld [vmem:[%s3027_s26] sm:$0xff] }
  0x7e   : > { %vm973_vm3 = vcmp.gt.f32.partialorder %v972_v20, 0.0  ;;  %s962_s15 = sadd.s32 1, %s3028_s28  ;;  %s3034_s28 = scalar_lea.vmem [#allocation9], %s2687_s14 }
  0x7f   : > { %v976_v21 = vsel %vm973_vm3, 1, %v2394_v5  ;;  %p2792_p1 = scmp.eq.s32.totalorder %s962_s15, 1  ;;  %p2797_p3 = scmp.eq.s32.totalorder %s962_s15, 2 }
  0x80   : > { %s3032_s0 = scalar_lea.vmem %s3031_s3, %s2703_s9 }
  0xf8   : > { %v1050_v7 = vpop.f32.mrf.mxu0 }
  0xf9   : > { %v1051_v8 = vadd.f32 %v2079_v6, %v1050_v7 }
  0xfb   : > { %v1054_v9 = vpack.c.bf16 %v1051_v8, %v1051_v8 }
  0xfd   : > { %v1056_v10 = vunpack.c.l.b16 %v1054_v9 }
  0xff   : > { %v2763_v11 = vpack.c.b16 %v1056_v10, %v1056_v10 }
 0x100   : > { %v1052_v12 = vpop.f32.mrf.mxu0 }
 0x101   : > { %1245 = vrot.lane.b32.xlu2 %v2763_v11, %s2395_s5  ;;  %1117 = vrot.lane.b32.xlu1 %v2763_v11, %s2396_s22  ;;  %s1005_s22 = scalar_select %p2792_p1, 1, 0 }
 0x102   : > { %1058 = vrot.lane.b32.xlu0 %v2763_v11, %s2397_s21  ;;  %s1008_s21 = scalar_select %p2797_p3, 1, 0 }
 0x109   : > { %1183 = vrot.lane.b32.xlu2 %v2763_v11, %s2398_s12  ;;  %1247 = vrot.lane.b32.xlu1 %v2763_v11, %s2399_s27  ;;  %s1006_s12 = scvt.s32.f32 %s1005_s22  ;;  %s1009_s27 = scvt.s32.f32 %s1008_s21 }
 0x10a   : > { %1119 = vrot.lane.b32.xlu0 %v2763_v11, %s2400_s4  ;;  %s2406_s4 = smov 40  }
 0x10b   : > { %v1010_v43 = vstv %s1006_s12  ;;  %v1013_v47 = vstv %s1009_s27 }
 0x111   : > { %989 = vperm.xlu1 %2076, %v985_v13   ;;  %978 = vperm.xlu2 %2077, %v976_v21  }
 0x112   : > { %1181 = vrot.lane.b32.xlu0 %v2763_v11, %s2401_s23  ;;  %s2410_s23 = smov 24  }
 0x119   : > { %1092 = vrot.lane.b32.xlu1 %v2763_v11, %s2402_s10 }
 0x121   : > { %1152 = vrot.lane.b32.xlu1 %v2763_v11, %s2403_s13 }
 0x15b   : > { %v1246_v14 = vpop.permute.xlu2 %1245 }
 0x163   : > { %v1184_v15 = vpop.permute.xlu2 %1183 }
 0x164   : > { %v1189_v16 = vsel %vm1060_vm2, %v1184_v15, 0 }
 0x165   : > { %1198 = vmatpush.bf16.xpose.msrb.mxu0 %v1189_v16 }
 0x16b   : > { %v979_v41 = vpop.permute.xlu2 %978 }
 0x16c   : > { %vm980_vm10 = vcmp.eq.s32.totalorder %v979_v41, 1 }
 0x16d   : > { %vm984_vm15 = vmand %vm980_vm10, %vm983_vm9  ;;  %vm1462_vm10 = vcmask 523264  }
 0x16e   : > { %vm997_vm3 = vmand %vm971_vm14, %vm984_vm15 }
 0x16f   : > { %v998_v49 = vsel %vm997_vm3, 0.0, %v2405_v44 }
 0x173   : > { %v1118_v17 = vpop.permute.xlu1 %1117 }
 0x174   : > { %v1059_v18 = vpop.permute.xlu0 %1058 }
 0x175   : > { %v1065_v19 = vsel %vm1060_vm2, %v1059_v18, 0 }
 0x176   : > { %1074 = vmatpush.bf16.xpose.msra.mxu1 %v1065_v19 }
 0x17b   : > { %v1248_v22 = vpop.permute.xlu1 %1247 }
 0x17c   : > { %v1120_v23 = vpop.permute.xlu0 %1119  ;;  %v1253_v24 = vsel %vm1060_vm2, %v1248_v22, 0 }
 0x17d   : > { %1867 = vmatmul.msk.bf16.vlgmr.msra.gmra.mxu1 %vm1060_vm2, %v1054_v9  ;;  %v1125_v25 = vsel %vm1060_vm2, %v1120_v23, 0 }
 0x17e   : > { %1134 = vmatpush.bf16.xpose.msra.mxu3 %v1125_v25 }
 0x183   : > { %v990_v26 = vpop.permute.xlu1 %989 }
 0x184   : > { %v1182_v27 = vpop.permute.xlu0 %1181  ;;  %vm995_vm8 = vcmp.eq.f32.partialorder %v990_v26, %v2080_v38 }
 0x185   : > { %1869 = vmatmul.msk.bf16.vlgmr.msra.gmra.mxu3 %vm1060_vm2, %v1118_v17  ;;  %1871 = vmatmul.msk.bf16.vlgmr.msrb.gmra.mxu0 %vm1060_vm2, %v1182_v27  ;;  %vm999_vm11 = vmor %vm995_vm8, %vm996_vm7 }
 0x186   : > { %1262 = vmatpush.bf16.xpose.msrb.mxu3 %v1253_v24  ;;  %vm1001_vm13 = vmxor %vm995_vm8, %vm2404_vm12  ;;  %v1000_v45 = vsel %vm999_vm11, 0.0, %v2405_v44 }
 0x187   : > { %vm1002_vm0 = vmor %vm1001_vm13, %vm996_vm7  ;;  %v1011_v46 = vmul.f32 %v1010_v43, %v1000_v45 }
 0x188   : > { %v1003_v48 = vsel %vm1002_vm0, 0.0, %v2405_v44 }
 0x189   : > { %v1014_v50 = vmul.f32 %v1013_v47, %v1003_v48  ;;  %v1012_v51 = vadd.f32 %v1011_v46, %v998_v49 }
 0x18b   : > { %v1093_v28 = vpop.permute.xlu1 %1092  ;;  %v1015_v52 = vadd.f32 %v1014_v50, %v1012_v51 }
 0x18c   : > { %v1099_v29 = vsel %vm1097_vm4, %v1093_v28, 0 }
 0x18d   : > { %1108 = vmatpush.bf16.msra.mxu2 %v1099_v29 }
 0x193   : > { %v1153_v30 = vpop.permute.xlu1 %1152 }
 0x194   : > { %v1158_v31 = vsel %vm1097_vm4, %v1153_v30, 0 }
 0x195   : > { %1873 = vmatmul.msk.bf16.vlgmr.msrb.gmra.mxu3 %vm1060_vm2, %v1246_v14  ;;  %1167 = vmatpush.bf16.msrb.mxu2 %v1158_v31 }
 0x1fa   : > { %v1076_v53 = vpop.f32.mrf.mxu1 }
 0x1fb   : > { %v1080_v54 = vmul.f32 0.35355338, %v1076_v53 }
 0x1fd   : > { %v1081_v55 = vadd.f32 %v1080_v54, %v1015_v52 }
 0x1ff   : > { %v1082_v56 = vsel %vm1060_vm2, %v1081_v55, -inf }
 0x200   : > { %1083 = vmax.xlane.f32.xlu0 %v1082_v56 }
 0x202   : > { %v1078_v57 = vpop.f32.mrf.mxu1  ;;  %v1200_v58 = vpop.f32.mrf.mxu0 }
 0x203   : > { %v1204_v63 = vmul.f32 0.35355338, %v1200_v58  ;;  %v1918_v58 = vld [vmem:[%s2719_s30 + $0x8] sm:$0xff] }
 0x204   : > { %1340 = vmatpush.bf16.msra.mxu0 %v1918_v58 }
 0x205   : > { %v1205_v2 = vadd.f32 %v1204_v63, %v1015_v52 }
 0x207   : > { %v1206_v4 = vsel %vm1060_vm2, %v1205_v2, -inf }
 0x208   : > { %v1136_v59 = vpop.f32.mrf.mxu3 }
 0x209   : > { %v1140_v60 = vmul.f32 0.35355338, %v1136_v59  ;;  %v1917_v59 = vld [vmem:[%s2719_s30] sm:$0xff] }
 0x20a   : > { %v1202_v61 = vpop.f32.mrf.mxu0  ;;  %1341 = vmatpush.bf16.msra.mxu0 %v1917_v59 }
 0x20b   : > { %v1141_v62 = vadd.f32 %v1140_v60, %v1015_v52 }
 0x20d   : > { %v1142_v0 = vsel %vm1060_vm2, %v1141_v62, -inf }
 0x20e   : > { %1143 = vmax.xlane.f32.xlu2 %v1142_v0 }
 0x210   : > { %v1138_v1 = vpop.f32.mrf.mxu3 }
 0x211   : > { %v2081_v1 = vld [vmem:[%s3032_s0] ss:$0 sm:$0xff] }
 0x214   : > { %1280 = vrot.lane.b32.xlu0 %v2763_v11, %s2406_s4 }
 0x216   : > { %1207 = vmax.xlane.f32.xlu2 %v1206_v4 }
 0x218   : > { %v1264_v5 = vpop.f32.mrf.mxu3 }
 0x219   : > { %v1268_v6 = vmul.f32 0.35355338, %v1264_v5 }
 0x21b   : > { %v1269_v7 = vadd.f32 %v1268_v6, %v1015_v52 }
 0x21d   : > { %v1270_v8 = vsel %vm1060_vm2, %v1269_v7, -inf }
 0x21e   : > { %1271 = vmax.xlane.f32.xlu1 %v1270_v8  ;;  %v2411_v8 = vmov 32.0  }
 0x220   : > { %v1266_v9 = vpop.f32.mrf.mxu3 }
 0x22e   : > { %1216 = vrot.lane.b32.xlu2 %v2763_v11, %s2407_s16 }
 0x273   : > { %v1084_v10 = vpop.xlane.xlu0 %1083 }
 0x274   : > { %v1085_v12 = vsub.f32 %v1081_v55, %v1084_v10 }
 0x276   : > { %v1086_v13 = vmul.f32 1.442695, %v1085_v12 }
 0x278   : > { %2088 = vpow2.f32 %v1086_v13 }
 0x27e   : > { %v2089_v14 = vpop.eup %2088 }
 0x27f   : > { %v1088_v15 = vsel %vm1060_vm2, %v2089_v14, 0.0  ;;  %v1091_v16 = vpack.c.bf16 %v2089_v14, %v2089_v14 }
 0x280   : > { %1089 = vadd.xlane.f32.xlu2 %v1088_v15 }
 0x281   : > { %v1144_v17 = vpop.xlane.xlu2 %1143  ;;  %1868 = vmatmul.msk.bf16.vlgmr.msra.gmra.mxu2 %vm1060_vm2, %v1091_v16 }
 0x282   : > { %v1145_v18 = vsub.f32 %v1141_v62, %v1144_v17 }
 0x284   : > { %v1146_v19 = vmul.f32 1.442695, %v1145_v18 }
 0x286   : > { %2090 = vpow2.f32 %v1146_v19  ;;  %v1281_v20 = vpop.permute.xlu0 %1280 }
 0x287   : > { %v1286_v21 = vsel %vm1097_vm4, %v1281_v20, 0  ;;  %v1920_v20 = vld [vmem:[%s2724_s11 + $0x8] sm:$0xff] }
 0x288   : > { %1295 = vmatpush.bf16.msra.mxu2 %v1286_v21  ;;  %v1919_v21 = vld [vmem:[%s2724_s11] sm:$0xff] }
 0x289   : > { %v1208_v11 = vpop.xlane.xlu2 %1207 }
 0x28a   : > { %v1209_v22 = vsub.f32 %v1205_v2, %v1208_v11  ;;  %v1924_v11 = vld [vmem:[%s2741_s7 + $0x18] sm:$0xff] }
 0x28b   : > { %1470 = vmatpush.bf16.msra.mxu3 %v1924_v11 }
 0x28c   : > { %v2091_v23 = vpop.eup %2090  ;;  %v1210_v24 = vmul.f32 1.442695, %v1209_v22 }
 0x28d   : > { %v1148_v25 = vsel %vm1060_vm2, %v2091_v23, 0.0  ;;  %v1151_v26 = vpack.c.bf16 %v2091_v23, %v2091_v23 }
 0x28e   : > { %2092 = vpow2.f32 %v1210_v24  ;;  %1149 = vadd.xlane.f32.xlu1 %v1148_v25  ;;  %v1923_v24 = vld [vmem:[%s2741_s7 + $0x10] sm:$0xff] }
 0x28f   : > { %1471 = vmatpush.bf16.msra.mxu3 %v1923_v24 }
 0x291   : > { %v1272_v27 = vpop.xlane.xlu1 %1271  ;;  %v1217_v28 = vpop.permute.xlu2 %1216  ;;  %1870 = vmatmul.msk.bf16.vlgmr.msrb.gmra.mxu2 %vm1060_vm2, %v1151_v26  ;;  %v1922_v26 = vld [vmem:[%s2741_s7 + $0x8] sm:$0xff] }
 0x292   : > { %v1273_v29 = vsub.f32 %v1269_v7, %v1272_v27  ;;  %v1222_v30 = vsel %vm1097_vm4, %v1217_v28, 0  ;;  %vm1243_vm4 = vcmask 195712  }
 0x293   : > { %1231 = vmatpush.bf16.msrb.mxu1 %v1222_v30  ;;  %1472 = vmatpush.bf16.msra.mxu3 %v1922_v26 }
 0x294   : > { %v2093_v31 = vpop.eup %2092  ;;  %v1274_v32 = vmul.f32 1.442695, %v1273_v29 }
 0x295   : > { %v1212_v33 = vsel %vm1060_vm2, %v2093_v31, 0.0  ;;  %v1215_v34 = vpack.c.bf16 %v2093_v31, %v2093_v31 }
 0x296   : > { %2094 = vpow2.f32 %v1274_v32  ;;  %1213 = vadd.xlane.f32.xlu0 %v1212_v33  ;;  %v2082_v33 = vld [vmem:[%s952_s6] ss:$0 sm:$0xff] }
 0x297   : > { %1872 = vmatmul.msk.bf16.vlgmr.msrb.gmra.mxu1 %vm1060_vm2, %v1215_v34 }
 0x298   : > { %1417 = vmatpush.bf16.msra.mxu1 %v1920_v20 }
 0x29c   : > { %v2095_v35 = vpop.eup %2094  ;;  %1418 = vmatpush.bf16.msra.mxu1 %v1919_v21 }
 0x29d   : > { %v1276_v36 = vsel %vm1060_vm2, %v2095_v35, 0.0  ;;  %v1279_v37 = vpack.c.bf16 %v2095_v35, %v2095_v35  ;;  %v2083_v35 = vld [vmem:[%s3034_s28] ss:$0 sm:$0xff] }
 0x29e   : > { %1277 = vadd.xlane.f32.xlu1 %v1276_v36 }
 0x2a1   : > { %1874 = vmatmul.msk.bf16.vlgmr.msra.gmra.mxu2 %vm1060_vm2, %v1279_v37 }
 0x2f3   : > { %v1090_v38 = vpop.xlane.xlu2 %1089 }
 0x2f4   : > { %2096 = vrcp.f32 %v1090_v38 }
 0x2fa   : > { %v2097_v39 = vpop.eup %2096 }
 0x301   : > { %v1150_v42 = vpop.xlane.xlu1 %1149 }
 0x302   : > { %2098 = vrcp.f32 %v1150_v42 }
 0x304   : > { %v1110_v40 = vpop.f32.mrf.mxu2 }
 0x305   : > { %v1115_v41 = vmul.f32 %v2097_v39, %v1110_v40  ;;  %v1921_v40 = vld [vmem:[%s2741_s7] sm:$0xff] }
 0x306   : > { %1473 = vmatpush.bf16.msra.mxu3 %v1921_v40 }
 0x307   : > { %1116 = vst.msk [vmem:[#allocation3] sm:$0xff] %vm1060_vm2, %v1115_v41  ;;  %vm1179_vm2 = vcmask 130112   ;;  %v2084_v41 = vld [vmem:[%s929_s29] ss:$0 sm:$0xff]  ;;  %s3037_s29 = sld [smem:[#allocation22_spill]] }
 0x308   : > { %v2099_v45 = vpop.eup %2098 }
 0x309   : > { %v1214_v44 = vpop.xlane.xlu0 %1213 }
 0x30a   : > { %2100 = vrcp.f32 %v1214_v44 }
 0x30c   : > { %v1112_v43 = vpop.f32.mrf.mxu2 }
 0x30d   : > { %p1910_p5 = scmp.ne.s32.totalorder %s3037_s29, 1 }
 0x310   : > { %v2101_v50 = vpop.eup %2100 }
 0x311   : > { %v1278_v49 = vpop.xlane.xlu1 %1277 }
 0x312   : > { %2102 = vrcp.f32 %v1278_v49 }
 0x313   : > { %2104 = vrcp.f32 %v2411_v8 }
 0x314   : > { %v1169_v46 = vpop.f32.mrf.mxu2  ;;  %v1233_v47 = vpop.f32.mrf.mxu1 }
 0x315   : > { %v1174_v48 = vmul.f32 %v2099_v45, %v1169_v46  ;;  %v1238_v53 = vmul.f32 %v2101_v50, %v1233_v47  ;;  %v2085_v47 = vld [vmem:[%s945_s24] ss:$0 sm:$0xff] }
 0x317   : > { %1176 = vrot.lane.b32.xlu1 %v1174_v48, %s2408_s18 }
 0x318   : > { %v2103_v54 = vpop.eup %2102 }
 0x319   : > { %v2105_v9 = vpop.eup %2104 }
 0x31a   : > { %v1354_v10 = vmul.f32 32.0, %v2105_v9  ;;  %vm1358_vm6 = vweird.f32 %v2105_v9 }
 0x31c   : > { %v1171_v51 = vpop.f32.mrf.mxu2  ;;  %v1235_v52 = vpop.f32.mrf.mxu1  ;;  %v1355_v12 = vsub.f32 1.0, %v1354_v10 }
 0x31e   : > { %v1356_v13 = vmul.f32 %v2105_v9, %v1355_v12 }
 0x31f   : > { %1240 = vrot.lane.b32.xlu1 %v1238_v53, %s2409_s19 }
 0x320   : > { %v1357_v14 = vadd.f32 %v2105_v9, %v1356_v13 }
 0x322   : > { %v1359_v15 = vsel %vm1358_vm6, %v2105_v9, %v1357_v14 }
 0x324   : > { %v1297_v55 = vpop.f32.mrf.mxu2 }
 0x325   : > { %v1302_v56 = vmul.f32 %v2103_v54, %v1297_v55 }
 0x327   : > { %1304 = vrot.lane.b32.xlu0 %v1302_v56, %s2410_s23 }
 0x32c   : > { %v1299_v57 = vpop.f32.mrf.mxu2 }
 0x389   : > { %v1177_v60 = vpop.permute.xlu1 %1176 }
 0x38a   : > { %1180 = vst.msk [vmem:[#allocation3] sm:$0xff] %vm1179_vm2, %v1177_v60 }
 0x391   : > { %v1241_v61 = vpop.permute.xlu1 %1240 }
 0x392   : > { %1244 = vst.msk [vmem:[#allocation3] sm:$0xff] %vm1243_vm4, %v1241_v61 }
 0x399   : > { %v1305_v62 = vpop.permute.xlu0 %1304 }
 0x39a   : > { %1308 = vst.msk [vmem:[#allocation3] sm:$0xff] %vm1307_vm5, %v1305_v62 }
 0x3a1   : > { %v1309_v63 = vld [vmem:[#allocation3] sm:$0xff] }
 0x3a2   : > { %v1310_v0 = vpack.c.bf16 %v1309_v63, %v1309_v63 }
 0x3a4   : > { %1883 = vmatmul.msk.bf16.vlgmr.msra.gmra.mxu0 %vm1037_vm1, %v1310_v0 }
 0x421   : > { %v1343_v2 = vpop.f32.mrf.mxu0 }
 0x422   : > { %v1344_v4 = vadd.f32 %v2081_v1, %v1343_v2 }
 0x424   : > { %v1347_v5 = vadd.f32 %v1344_v4, %v2750_v3  ;;  %v2086_v4 = vld [vmem:[%s743_s8] ss:$0 sm:$0xff] }
 0x426   : > { %v1350_v6 = vsel %vm1037_vm1, %v1347_v5, 0.0 }
 0x427   : > { %1351 = vadd.xlane.f32.xlu1 %v1350_v6  ;;  %v2087_v6 = vld [vmem:[%s752_s2] ss:$0 sm:$0xff] }
 0x429   : > { %v1345_v7 = vpop.f32.mrf.mxu0 }
 0x49a   : > { %v1352_v16 = vpop.xlane.xlu1 %1351 }
 0x49b   : > { %v1360_v17 = vmul.f32 %v1359_v15, %v1352_v16 }
 0x49d   : > { %v1361_v3 = vsub.f32 %v1347_v5, %v1360_v17 }
 0x49f   : > { %v1362_v18 = vmul.f32 %v1361_v3, %v1361_v3 }
 0x4a1   : > { %v1363_v19 = vsel %vm1037_vm1, %v1362_v18, 0.0 }
 0x4a2   : > { %1364 = vadd.xlane.f32.xlu2 %v1363_v19 }
 0x515   : > { %v1365_v22 = vpop.xlane.xlu2 %1364 }
 0x516   : > { %v1366_v23 = vmul.f32 %v1365_v22, %v1359_v15 }
 0x518   : > { %v1367_v25 = vadd.f32 1e-05, %v1366_v23 }
 0x51a   : > { %2106 = vrsqrt.f32 %v1367_v25  ;;  %vm1374_vm8 = vweird.f32 %v1367_v25 }
 0x520   : > { %v2107_v27 = vpop.eup %2106 }
 0x521   : > { %v1369_v28 = vmul.f32 %v2107_v27, %v1367_v25  ;;  %vm1375_vm7 = vweird.f32 %v2107_v27 }
 0x522   : > { %vm1376_vm9 = vmor %vm1374_vm8, %vm1375_vm7 }
 0x523   : > { %v1370_v29 = vmul.f32 %v2107_v27, %v1369_v28 }
 0x525   : > { %v1371_v30 = vmul.f32 0.5, %v1370_v29 }
 0x527   : > { %v1372_v31 = vsub.f32 1.5, %v1371_v30 }
 0x529   : > { %v1373_v32 = vmul.f32 %v2107_v27, %v1372_v31 }
 0x52b   : > { %v1377_v34 = vsel %vm1376_vm9, %v2107_v27, %v1373_v32 }
 0x52c   : > { %v1378_v36 = vmul.f32 %v1377_v34, %v1361_v3 }
 0x52e   : > { %v1382_v37 = vmul.f32 %v2082_v33, %v1378_v36 }
 0x530   : > { %v1386_v38 = vadd.f32 %v2083_v35, %v1382_v37 }
 0x532   : > { %v1387_v39 = vpack.c.bf16 %v1386_v38, %v1386_v38 }
 0x534   : > { %1892 = vmatmul.msk.bf16.vlgmr.msra.gmra.mxu1 %vm1037_vm1, %v1387_v39 }
 0x5b1   : > { %v1420_v42 = vpop.f32.mrf.mxu1 }
 0x5b2   : > { %v1421_v43 = vadd.f32 %v2084_v41, %v1420_v42 }
 0x5b4   : > { %v1424_v44 = vmax.f32 %v1421_v43, 0.0 }
 0x5b6   : > { %v1425_v45 = vpack.c.bf16 %v1424_v44, %v1424_v44 }
 0x5b8   : > { %1909 = vmatmul.msk.bf16.vlgmr.msra.gmra.mxu3 %vm1462_vm10, %v1425_v45 }
 0x5b9   : > { %v1422_v46 = vpop.f32.mrf.mxu1 }
 0x63b   : > { %v1475_v48 = vpop.f32.mrf.mxu3 }
 0x63c   : > { %v1476_v49 = vadd.f32 %v2085_v47, %v1475_v48 }
 0x63e   : > { %v1479_v50 = vadd.f32 %v1476_v49, %v1386_v38 }
 0x640   : > { %v1482_v51 = vsel %vm1037_vm1, %v1479_v50, 0.0 }
 0x641   : > { %1483 = vadd.xlane.f32.xlu2 %v1482_v51 }
 0x643   : > { %v1477_v52 = vpop.f32.mrf.mxu3 }
 0x6b4   : > { %v1484_v53 = vpop.xlane.xlu2 %1483 }
 0x6b5   : > { %v1485_v54 = vmul.f32 %v1484_v53, %v1359_v15 }
 0x6b7   : > { %v1486_v55 = vsub.f32 %v1479_v50, %v1485_v54 }
 0x6b9   : > { %v1487_v56 = vmul.f32 %v1486_v55, %v1486_v55 }
 0x6bb   : > { %v1488_v57 = vsel %vm1037_vm1, %v1487_v56, 0.0 }
 0x6bc   : > { %1489 = vadd.xlane.f32.xlu0 %v1488_v57 }
 0x72f   : > { %v1490_v58 = vpop.xlane.xlu0 %1489 }
 0x730   : > { %v1491_v59 = vmul.f32 %v1490_v58, %v1359_v15 }
 0x732   : > { %v1492_v60 = vadd.f32 1e-05, %v1491_v59 }
 0x734   : > { %2108 = vrsqrt.f32 %v1492_v60  ;;  %vm1499_vm12 = vweird.f32 %v1492_v60 }
 0x73a   : > { %v2109_v61 = vpop.eup %2108 }
 0x73b   : > { %v1494_v62 = vmul.f32 %v2109_v61, %v1492_v60  ;;  %vm1500_vm11 = vweird.f32 %v2109_v61 }
 0x73c   : > { %vm1501_vm13 = vmor %vm1499_vm12, %vm1500_vm11 }
 0x73d   : > { %v1495_v63 = vmul.f32 %v2109_v61, %v1494_v62 }
 0x73f   : > { %v1496_v0 = vmul.f32 0.5, %v1495_v63 }
 0x741   : > { %v1497_v1 = vsub.f32 1.5, %v1496_v0 }
 0x743   : > { %v1498_v2 = vmul.f32 %v2109_v61, %v1497_v1 }
 0x745   : > { %v1502_v5 = vsel %vm1501_vm13, %v2109_v61, %v1498_v2 }
 0x746   : > { %v1503_v7 = vmul.f32 %v1502_v5, %v1486_v55 }
 0x748   : > { %v1507_v8 = vmul.f32 %v2086_v4, %v1503_v7  ;;  %1516 = sbr.rel (%p1910_p5) target bundleno = 1870 (0x74e), region = 116 }
 0x74a   : > { %v1511_v9 = vadd.f32 %v2087_v6, %v1507_v8 }
 0x74c   : > { %1512 = vst.msk [vmem:[#allocation2] sm:$0xff] %vm1037_vm1, %v1511_v9 }
 0x74d   : > { %1517 = vst.msk [vmem:[%s881_s25] sm:$0xff] %vm1037_vm1, %v1511_v9 }
 0x74e PF: > { %s3038_s9 = sld [smem:[#allocation23_spill]]  ;;  %s1531_s4 = sshll.u32 %s881_s25, 4  ;;  %s1532_s4 = int_to_ptr.vmem [resolvable:$true] %s1531_s4 }
 0x74f   : > { %s3039_s24 = sld [smem:[#allocation18_spill]] }
 0x750   : > { %s3041_s12 = sld [smem:[#allocation50_spill]] }
 0x754   : > { %s1912_s8 = sshll.u32 %s3038_s9, 3 }
 0x755   : > { %s3042_s18 = sand.u32 1, %s3039_s24  }
 0x756   : > { %s1529_s27 = scalar_lea.hbm %s3041_s12, %s1912_s8  ;;  %s1519_s19 = scalar_lea.sflag [#allocation6], %s3042_s18 }
 0x757   : > { %s1533_s16 = sshll.u32 %s1529_s27, 4  ;;  %s2280_s0 = scalar_lea.hbm %s3041_s12, 16  ;;  %s1534_s16 = int_to_ptr.hbm [resolvable:$true] %s1533_s16 }
 0x758   : > { %s2274_s23 = sshra.s32 %s1534_s16, 4  ;;  %s2275_s23 = int_to_ptr.hbm [resolvable:$true] %s2274_s23 }
 0x759   : > { %s2276_s10 = scalar_lea.hbm %s2275_s23, 8  ;;  %p2281_p0 = scmp.lt.s32.totalorder %s2275_s23, %s3041_s12 }
 0x75a   : > { %p2277_p6 = scmp.ne.s32.totalorder %s2275_s23, %s2276_s10  ;;  %p2282_p11 = scmp.lt.s32.totalorder %s2280_s0, %s2276_s10 }
 0x75c   : > { %p2278_p7 = pnand %p2277_p6, %p2576_p8  ;;  %p2283_p13 = por %p2282_p11, %p2281_p0 }
 0x75e   : > { %p2279_p9 = pneg %p2278_p7 }
 0x760   : > { %p2284_p2 = pnand %p2283_p13, %p2279_p9 }
 0x762   : > { %2287 = shalt.err (!%p2284_p2)
}
 0x763   : > { %1939 = dma.vmem_to_hbm [thread:$0]  (%p2576_p8), %s1532_s4, 128, %s1534_s16, %s1519_s19  }
 0x764 PF: > { %s3043_s20 = sld [smem:[#allocation17_spill]]  ;;  %p1967_p12 = scmp.ge.s32.totalorder %s2390_s1, 2 }
 0x766   : > { %p1959_p4 = pnand %p1967_p12, %p2581_p10 }
 0x768   : > { %p1960_p1 = pneg %p1959_p4 }
 0x76a   : > { %s1545_s26 = sand.u32 1, %s3043_s20  }
 0x76b   : > { %s1546_s28 = scalar_lea.sflag [#allocation6], %s1545_s26 }
 0x76c   : > { %2345 = dma.done.wait (%p1960_p1), %s1546_s28, 128  }
 0x76d   : > { %2347 = vsyncadd (%p1960_p1), %s1546_s28, 4294967168  ;;  %s32_s1 = sadd.s32 1, %s2390_s1   ;;  %s3045_s24 = sld [smem:[#allocation18_spill]] }
 0x76e   : > { %p29_p3 = scmp.ge.s32.totalorder %s32_s1, 6   ;;  %s3046_s25 = sld [smem:[#allocation19_spill]] }
 0x76f   : > { %s3047_s26 = sld [smem:[#allocation31_spill]] }
 0x770   : > { %s3048_s27 = sld [smem:[#allocation20_spill]] }
 0x771   : > { %s3049_s28 = sld [smem:[#allocation21_spill]] }
 0x772   : > { %s3050_s29 = sld [smem:[#allocation32_spill]]  ;;  %31 = sbr.rel (!%p29_p3) target bundleno = 28 (0x1c), region = 197 }
 0x773   : > { %s3051_s0 = sld [smem:[#allocation24_spill]] }
 0x774   : > { %s3052_s30 = sld [smem:[#allocation25_spill]] }
 0x775   : > { %s3053_s18 = sld [smem:[#allocation29_spill]] }
 0x776   : > { %s3054_s19 = sld [smem:[#allocation30_spill]] }
 0x777   :  { %1552 = vsyncpa [#allocation5], 1 }
 0x778   :  { %1554 = vsyncpa [#allocation5 + $0x1], 1 }
 0x779   :  { %1555 = vsyncpa [#allocation8], 1 }
 0x77a   :  { %1556 = vsyncpa [#allocation6], 1 }
 0x77b   :  { %1558 = vsyncpa [#allocation6 + $0x1], 1 }

</bundles_post_ra>
